<compile_context>
chip_gen: v7x
topology: tpu7x:2x2x1
jax: 0.10.0
libtpu: 0.0.40
codegen_flags: <defaults>
</compile_context>

<pallas_src>
import functools

import jax
import jax.numpy as jnp
from jax import lax
from jax.experimental import pallas as pl
from jax.experimental.pallas import tpu as pltpu

LN_EPS = 1e-5
NEG_INF = float(jnp.finfo(jnp.float32).min)


# ----------------------------------------------------------------------------
# Fused Pallas kernel: num_layers x (pre-LN attention + residual, pre-LN FFN
# + residual) for a single batch element, with shared weights.
# ----------------------------------------------------------------------------
def _opt_block_kernel(num_layers, num_heads, head_dim,
                      x_ref, amask_ref,
                      ln1g_ref, ln1b_ref,
                      wq_ref, bq_ref, wk_ref, bk_ref, wv_ref, bv_ref,
                      wo_ref, bo_ref,
                      ln2g_ref, ln2b_ref,
                      w1_ref, b1_ref, w2_ref, b2_ref,
                      out_ref):
    S = x_ref.shape[1]
    H = x_ref.shape[2]
    nh, hd = num_heads, head_dim
    scale = float(hd) ** -0.5

    x = x_ref[0]                                   # (S, H)

    # ---- additive causal + padding mask, built in-kernel (VPU only) -------
    row = lax.broadcasted_iota(jnp.int32, (S, S), 0)
    col = lax.broadcasted_iota(jnp.int32, (S, S), 1)
    keep = (col <= row) & (amask_ref[0] > 0.5)     # (S,S), pad mask (1,S) bcast
    add_mask = jnp.where(keep, 0.0, NEG_INF)       # single finite NEG_INF

    # ---- hoist all weight loads out of the layer loop ----------------------
    ln1g, ln1b = ln1g_ref[...], ln1b_ref[...]
    ln2g, ln2b = ln2g_ref[...], ln2b_ref[...]
    wq, wk, wv = wq_ref[...], wk_ref[...], wv_ref[...]   # (nh, H, hd)
    bq, bk, bv = bq_ref[...], bk_ref[...], bv_ref[...]   # (nh, 1, hd)
    wo, bo = wo_ref[...], bo_ref[...]                    # (nh, hd, H), (1, H)
    w1, b1 = w1_ref[...], b1_ref[...]                    # (H, F), (1, F)
    w2, b2 = w2_ref[...], b2_ref[...]                    # (F, H), (1, H)

    h = x
    for _ in range(num_layers):                    # weight sharing: same params
        # ---------------- self-attention (pre-LN) --------------------------
        mu = jnp.mean(h, axis=-1, keepdims=True)
        var = jnp.mean(jnp.square(h - mu), axis=-1, keepdims=True)
        hn = (h - mu) * lax.rsqrt(var + LN_EPS) * ln1g + ln1b

        hb = jnp.broadcast_to(hn[None], (nh, S, H))            # (nh, S, H)
        q = jnp.einsum('hsd,hdk->hsk', hb, wq,
                       preferred_element_type=jnp.float32) + bq
        k = jnp.einsum('hsd,hdk->hsk', hb, wk,
                       preferred_element_type=jnp.float32) + bk
        v = jnp.einsum('hsd,hdk->hsk', hb, wv,
                       preferred_element_type=jnp.float32) + bv
        q = q * scale

        s = jnp.einsum('hqd,hkd->hqk', q, k,
                       preferred_element_type=jnp.float32)     # (nh, S, S)
        s = s + add_mask[None]
        s = s - jnp.max(s, axis=-1, keepdims=True)
        p = jnp.exp(s)
        p = p * pl.reciprocal(jnp.sum(p, axis=-1, keepdims=True), approx=True)

        ctx = jnp.einsum('hqk,hkd->hqd', p, v,
                         preferred_element_type=jnp.float32)   # (nh, S, hd)
        attn = jnp.einsum('hqd,hdk->hqk', ctx, wo,
                          preferred_element_type=jnp.float32)  # (nh, S, H)
        attn = jnp.sum(attn, axis=0) + bo                      # (S, H)
        h = h + attn

        # ---------------- feed-forward (pre-LN, ReLU) -----------------------
        mu2 = jnp.mean(h, axis=-1, keepdims=True)
        var2 = jnp.mean(jnp.square(h - mu2), axis=-1, keepdims=True)
        hn2 = (h - mu2) * lax.rsqrt(var2 + LN_EPS) * ln2g + ln2b

        f = jnp.maximum(
            jnp.dot(hn2, w1, preferred_element_type=jnp.float32) + b1, 0.0)
        h = h + jnp.dot(f, w2, preferred_element_type=jnp.float32) + b2

    out_ref[0] = h


# ----------------------------------------------------------------------------
# Wrapper: OPTBlockWS.forward
# ----------------------------------------------------------------------------
def opt_block_ws(layer_params, hidden_states, attention_mask=None, *,
                 num_layers, head_dim,
                 output_hidden_states=False, output_attentions=False):
    if output_hidden_states or output_attentions:
        # TODO(synk): intermediate states/attn probs are not emitted by the
        # fused kernel; only the default-False path is implemented.
        raise NotImplementedError("fused kernel implements the default path")

    B, S, H = hidden_states.shape
    nh = H // head_dim
    hd = head_dim

    if attention_mask is None:
        attention_mask = jnp.ones((B, S), jnp.float32)
    amask = attention_mask.astype(jnp.float32).reshape(B, 1, S)

    # Host-side (free) re-layout of attention weights into head-major form so
    # the kernel can do lane-dense batched contractions with no in-kernel
    # slicing / concatenation.
    wq3 = layer_params["wq"].reshape(H, nh, hd).transpose(1, 0, 2)  # (nh,H,hd)
    wk3 = layer_params["wk"].reshape(H, nh, hd).transpose(1, 0, 2)
    wv3 = layer_params["wv"].reshape(H, nh, hd).transpose(1, 0, 2)
    wo3 = layer_params["wo"].reshape(nh, hd, H)                     # (nh,hd,H)
    bq3 = layer_params["bq"].reshape(nh, 1, hd)
    bk3 = layer_params["bk"].reshape(nh, 1, hd)
    bv3 = layer_params["bv"].reshape(nh, 1, hd)

    def rep(arr):
        shp = arr.shape
        return pl.BlockSpec(shp, lambda b, _n=len(shp): (0,) * _n)

    weights = (layer_params["ln1g"], layer_params["ln1b"],
               wq3, bq3, wk3, bk3, wv3, bv3,
               wo3, layer_params["bo"],
               layer_params["ln2g"], layer_params["ln2b"],
               layer_params["w1"], layer_params["b1"],
               layer_params["w2"], layer_params["b2"])

    in_specs = [
        pl.BlockSpec((1, S, H), lambda b: (b, 0, 0)),   # hidden states
        pl.BlockSpec((1, 1, S), lambda b: (b, 0, 0)),   # (B,1,S) padding mask
    ] + [rep(w) for w in weights]

    kernel = functools.partial(_opt_block_kernel, num_layers, nh, hd)
    out = pl.pallas_call(
        kernel,
        out_shape=jax.ShapeDtypeStruct((B, S, H), jnp.float32),
        grid=(B,),
        in_specs=in_specs,
        out_specs=pl.BlockSpec((1, S, H), lambda b: (b, 0, 0)),
        compiler_params=pltpu.CompilerParams(
            dimension_semantics=("parallel",)),          # 2 TCs on v7x
    )(hidden_states, amask, *weights)

    # Matches PyTorch return: (hidden_states, all_hidden_states, all_self_attns)
    return (out, (), ())


# ----------------------------------------------------------------------------
# Deterministic synthetic parameters for one shared OPTLayer
# ----------------------------------------------------------------------------
def init_layer_params(key, hidden_size, ffn_dim):
    H, F = hidden_size, ffn_dim
    keys = iter(jax.random.split(key, 16))

    def nrm(shape):
        return 0.02 * jax.random.normal(next(keys), shape, dtype=jnp.float32)

    return {
        "ln1g": jnp.ones((1, H), jnp.float32),
        "ln1b": jnp.zeros((1, H), jnp.float32),
        "wq": nrm((H, H)), "bq": jnp.zeros((1, H), jnp.float32),
        "wk": nrm((H, H)), "bk": jnp.zeros((1, H), jnp.float32),
        "wv": nrm((H, H)), "bv": jnp.zeros((1, H), jnp.float32),
        "wo": nrm((H, H)), "bo": jnp.zeros((1, H), jnp.float32),
        "ln2g": jnp.ones((1, H), jnp.float32),
        "ln2b": jnp.zeros((1, H), jnp.float32),
        "w1": nrm((H, F)), "b1": jnp.zeros((1, F), jnp.float32),
        "w2": nrm((F, H)), "b2": jnp.zeros((1, H), jnp.float32),
    }


# ----------------------------------------------------------------------------
if __name__ == "__main__":
    key = jax.random.PRNGKey(0)
    k_params, k_hidden, k_mask = jax.random.split(key, 3)

    # Small shapes consistent with the module: B=2, S=8, H=32, head_dim=8,
    # ffn_dim=64, num_layers=2 (weight-shared).
    B, S, H, HD, F, L = 2, 8, 32, 8, 64, 2

    params = init_layer_params(k_params, H, F)
    hidden = 0.02 * jax.random.normal(k_hidden, (B, S, H), dtype=jnp.float32)

    # Default path (attention_mask=None -> causal only).
    out, all_hs, all_attn = opt_block_ws(params, hidden, None,
                                         num_layers=L, head_dim=HD)
    jax.block_until_ready(out)
    assert out.shape == (B, S, H)
    assert all_hs == () and all_attn == ()
    assert bool(jnp.all(jnp.isfinite(out)))

    # Padding-mask path (exercises the in-kernel causal+padding mask build;
    # stays NaN-free even for fully-masked rows thanks to the finite NEG_INF).
    pad_mask = jnp.ones((B, S), jnp.float32).at[:, -2:].set(0.0)
    out2, _, _ = opt_block_ws(params, hidden, pad_mask,
                              num_layers=L, head_dim=HD)
    jax.block_until_ready(out2)
    assert out2.shape == (B, S, H)
    assert bool(jnp.all(jnp.isfinite(out2)))

    print("KERNEL_OK")
</pallas_src>

<mosaic_0001>
module attributes {stable_mosaic.version = 11 : i64} {
  func.func @_opt_block_kernel(%arg0: i32, %arg1: memref<1x8x32xf32, #tpu.memory_space<vmem>>, %arg2: memref<1x1x8xf32, #tpu.memory_space<vmem>>, %arg3: memref<1x32xf32, #tpu.memory_space<vmem>>, %arg4: memref<1x32xf32, #tpu.memory_space<vmem>>, %arg5: memref<4x32x8xf32, #tpu.memory_space<vmem>>, %arg6: memref<4x1x8xf32, #tpu.memory_space<vmem>>, %arg7: memref<4x32x8xf32, #tpu.memory_space<vmem>>, %arg8: memref<4x1x8xf32, #tpu.memory_space<vmem>>, %arg9: memref<4x32x8xf32, #tpu.memory_space<vmem>>, %arg10: memref<4x1x8xf32, #tpu.memory_space<vmem>>, %arg11: memref<4x8x32xf32, #tpu.memory_space<vmem>>, %arg12: memref<1x32xf32, #tpu.memory_space<vmem>>, %arg13: memref<1x32xf32, #tpu.memory_space<vmem>>, %arg14: memref<1x32xf32, #tpu.memory_space<vmem>>, %arg15: memref<32x64xf32, #tpu.memory_space<vmem>>, %arg16: memref<1x64xf32, #tpu.memory_space<vmem>>, %arg17: memref<64x32xf32, #tpu.memory_space<vmem>>, %arg18: memref<1x32xf32, #tpu.memory_space<vmem>>, %arg19: memref<1x8x32xf32, #tpu.memory_space<vmem>>) attributes {dimension_semantics = [#tpu.dimension_semantics<parallel>], iteration_bounds = array<i64: 2>, scalar_prefetch = 0 : i64, scratch_operands = 0 : i64, tpu.core_type = #tpu.core_type<tc>, window_params = [{transform_indices = @transform_0, window_bounds = array<i64: 1, 8, 32>}, {transform_indices = @transform_1, window_bounds = array<i64: 1, 1, 8>}, {pipeline_mode = #tpu.pipeline_mode<synchronous>, transform_indices = @transform_2, window_bounds = array<i64: 1, 32>}, {pipeline_mode = #tpu.pipeline_mode<synchronous>, transform_indices = @transform_3, window_bounds = array<i64: 1, 32>}, {pipeline_mode = #tpu.pipeline_mode<synchronous>, transform_indices = @transform_4, window_bounds = array<i64: 4, 32, 8>}, {pipeline_mode = #tpu.pipeline_mode<synchronous>, transform_indices = @transform_5, window_bounds = array<i64: 4, 1, 8>}, {pipeline_mode = #tpu.pipeline_mode<synchronous>, transform_indices = @transform_6, window_bounds = array<i64: 4, 32, 8>}, {pipeline_mode = #tpu.pipeline_mode<synchronous>, transform_indices = @transform_7, window_bounds = array<i64: 4, 1, 8>}, {pipeline_mode = #tpu.pipeline_mode<synchronous>, transform_indices = @transform_8, window_bounds = array<i64: 4, 32, 8>}, {pipeline_mode = #tpu.pipeline_mode<synchronous>, transform_indices = @transform_9, window_bounds = array<i64: 4, 1, 8>}, {pipeline_mode = #tpu.pipeline_mode<synchronous>, transform_indices = @transform_10, window_bounds = array<i64: 4, 8, 32>}, {pipeline_mode = #tpu.pipeline_mode<synchronous>, transform_indices = @transform_11, window_bounds = array<i64: 1, 32>}, {pipeline_mode = #tpu.pipeline_mode<synchronous>, transform_indices = @transform_12, window_bounds = array<i64: 1, 32>}, {pipeline_mode = #tpu.pipeline_mode<synchronous>, transform_indices = @transform_13, window_bounds = array<i64: 1, 32>}, {pipeline_mode = #tpu.pipeline_mode<synchronous>, transform_indices = @transform_14, window_bounds = array<i64: 32, 64>}, {pipeline_mode = #tpu.pipeline_mode<synchronous>, transform_indices = @transform_15, window_bounds = array<i64: 1, 64>}, {pipeline_mode = #tpu.pipeline_mode<synchronous>, transform_indices = @transform_16, window_bounds = array<i64: 64, 32>}, {pipeline_mode = #tpu.pipeline_mode<synchronous>, transform_indices = @transform_17, window_bounds = array<i64: 1, 32>}, {transform_indices = @transform_18, window_bounds = array<i64: 1, 8, 32>}]} {
    %c0 = arith.constant 0 : index
    %c0_0 = arith.constant 0 : index
    %c0_1 = arith.constant 0 : index
    %0 = vector.load %arg1[%c0, %c0_0, %c0_1] : memref<1x8x32xf32, #tpu.memory_space<vmem>>, vector<1x8x32xf32>
    %1 = vector.shape_cast %0 : vector<1x8x32xf32> to vector<8x32xf32>
    %2 = tpu.iota {dimensions = array<i32: 0>} : vector<8x8xi32>
    %3 = tpu.iota {dimensions = array<i32: 1>} : vector<8x8xi32>
    %4 = arith.cmpi sle, %3, %2 : vector<8x8xi32>
    %c0_2 = arith.constant 0 : index
    %c0_3 = arith.constant 0 : index
    %c0_4 = arith.constant 0 : index
    %5 = vector.load %arg2[%c0_2, %c0_3, %c0_4] : memref<1x1x8xf32, #tpu.memory_space<vmem>>, vector<1x1x8xf32>
    %6 = vector.shape_cast %5 : vector<1x1x8xf32> to vector<1x8xf32>
    %cst = arith.constant 5.000000e-01 : f32
    %7 = vector.broadcast %cst : f32 to vector<1x8xf32>
    %8 = arith.cmpf ogt, %6, %7 : vector<1x8xf32>
    %9 = vector.broadcast %8 : vector<1x8xi1> to vector<8x8xi1>
    %10 = arith.andi %4, %9 : vector<8x8xi1>
    %cst_5 = arith.constant 0.000000e+00 : f32
    %cst_6 = arith.constant -3.40282347E+38 : f32
    %11 = vector.broadcast %cst_5 : f32 to vector<8x8xf32>
    %12 = vector.broadcast %cst_6 : f32 to vector<8x8xf32>
    %13 = arith.select %10, %11, %12 : vector<8x8xi1>, vector<8x8xf32>
    %c0_7 = arith.constant 0 : index
    %c0_8 = arith.constant 0 : index
    %14 = vector.load %arg3[%c0_7, %c0_8] : memref<1x32xf32, #tpu.memory_space<vmem>>, vector<1x32xf32>
    %c0_9 = arith.constant 0 : index
    %c0_10 = arith.constant 0 : index
    %15 = vector.load %arg4[%c0_9, %c0_10] : memref<1x32xf32, #tpu.memory_space<vmem>>, vector<1x32xf32>
    %c0_11 = arith.constant 0 : index
    %c0_12 = arith.constant 0 : index
    %16 = vector.load %arg13[%c0_11, %c0_12] : memref<1x32xf32, #tpu.memory_space<vmem>>, vector<1x32xf32>
    %c0_13 = arith.constant 0 : index
    %c0_14 = arith.constant 0 : index
    %17 = vector.load %arg14[%c0_13, %c0_14] : memref<1x32xf32, #tpu.memory_space<vmem>>, vector<1x32xf32>
    %c0_15 = arith.constant 0 : index
    %c0_16 = arith.constant 0 : index
    %c0_17 = arith.constant 0 : index
    %18 = vector.load %arg5[%c0_15, %c0_16, %c0_17] : memref<4x32x8xf32, #tpu.memory_space<vmem>>, vector<4x32x8xf32>
    %c0_18 = arith.constant 0 : index
    %c0_19 = arith.constant 0 : index
    %c0_20 = arith.constant 0 : index
    %19 = vector.load %arg7[%c0_18, %c0_19, %c0_20] : memref<4x32x8xf32, #tpu.memory_space<vmem>>, vector<4x32x8xf32>
    %c0_21 = arith.constant 0 : index
    %c0_22 = arith.constant 0 : index
    %c0_23 = arith.constant 0 : index
    %20 = vector.load %arg9[%c0_21, %c0_22, %c0_23] : memref<4x32x8xf32, #tpu.memory_space<vmem>>, vector<4x32x8xf32>
    %c0_24 = arith.constant 0 : index
    %c0_25 = arith.constant 0 : index
    %c0_26 = arith.constant 0 : index
    %21 = vector.load %arg6[%c0_24, %c0_25, %c0_26] : memref<4x1x8xf32, #tpu.memory_space<vmem>>, vector<4x1x8xf32>
    %c0_27 = arith.constant 0 : index
    %c0_28 = arith.constant 0 : index
    %c0_29 = arith.constant 0 : index
    %22 = vector.load %arg8[%c0_27, %c0_28, %c0_29] : memref<4x1x8xf32, #tpu.memory_space<vmem>>, vector<4x1x8xf32>
    %c0_30 = arith.constant 0 : index
    %c0_31 = arith.constant 0 : index
    %c0_32 = arith.constant 0 : index
    %23 = vector.load %arg10[%c0_30, %c0_31, %c0_32] : memref<4x1x8xf32, #tpu.memory_space<vmem>>, vector<4x1x8xf32>
    %c0_33 = arith.constant 0 : index
    %c0_34 = arith.constant 0 : index
    %c0_35 = arith.constant 0 : index
    %24 = vector.load %arg11[%c0_33, %c0_34, %c0_35] : memref<4x8x32xf32, #tpu.memory_space<vmem>>, vector<4x8x32xf32>
    %c0_36 = arith.constant 0 : index
    %c0_37 = arith.constant 0 : index
    %25 = vector.load %arg12[%c0_36, %c0_37] : memref<1x32xf32, #tpu.memory_space<vmem>>, vector<1x32xf32>
    %c0_38 = arith.constant 0 : index
    %c0_39 = arith.constant 0 : index
    %26 = vector.load %arg15[%c0_38, %c0_39] : memref<32x64xf32, #tpu.memory_space<vmem>>, vector<32x64xf32>
    %c0_40 = arith.constant 0 : index
    %c0_41 = arith.constant 0 : index
    %27 = vector.load %arg16[%c0_40, %c0_41] : memref<1x64xf32, #tpu.memory_space<vmem>>, vector<1x64xf32>
    %c0_42 = arith.constant 0 : index
    %c0_43 = arith.constant 0 : index
    %28 = vector.load %arg17[%c0_42, %c0_43] : memref<64x32xf32, #tpu.memory_space<vmem>>, vector<64x32xf32>
    %c0_44 = arith.constant 0 : index
    %c0_45 = arith.constant 0 : index
    %29 = vector.load %arg18[%c0_44, %c0_45] : memref<1x32xf32, #tpu.memory_space<vmem>>, vector<1x32xf32>
    %cst_46 = arith.constant dense<0.000000e+00> : vector<8xf32>
    %30 = vector.multi_reduction <add>, %1, %cst_46 [1] : vector<8x32xf32> to vector<8xf32>
    %31 = vector.shape_cast %30 : vector<8xf32> to vector<8x1xf32>
    %cst_47 = arith.constant 3.200000e+01 : f32
    %32 = vector.broadcast %cst_47 : f32 to vector<8x1xf32>
    %33 = arith.divf %31, %32 : vector<8x1xf32>
    %34 = vector.broadcast %33 : vector<8x1xf32> to vector<8x32xf32>
    %35 = arith.subf %1, %34 : vector<8x32xf32>
    %36 = arith.mulf %35, %35 : vector<8x32xf32>
    %cst_48 = arith.constant dense<0.000000e+00> : vector<8xf32>
    %37 = vector.multi_reduction <add>, %36, %cst_48 [1] : vector<8x32xf32> to vector<8xf32>
    %38 = vector.shape_cast %37 : vector<8xf32> to vector<8x1xf32>
    %cst_49 = arith.constant 3.200000e+01 : f32
    %39 = vector.broadcast %cst_49 : f32 to vector<8x1xf32>
    %40 = arith.divf %38, %39 : vector<8x1xf32>
    %41 = vector.broadcast %33 : vector<8x1xf32> to vector<8x32xf32>
    %42 = arith.subf %1, %41 : vector<8x32xf32>
    %cst_50 = arith.constant 9.99999974E-6 : f32
    %43 = vector.broadcast %cst_50 : f32 to vector<8x1xf32>
    %44 = arith.addf %40, %43 : vector<8x1xf32>
    %45 = math.rsqrt %44 : vector<8x1xf32>
    %46 = vector.broadcast %45 : vector<8x1xf32> to vector<8x32xf32>
    %47 = arith.mulf %42, %46 : vector<8x32xf32>
    %48 = vector.broadcast %14 : vector<1x32xf32> to vector<8x32xf32>
    %49 = arith.mulf %47, %48 : vector<8x32xf32>
    %50 = vector.broadcast %15 : vector<1x32xf32> to vector<8x32xf32>
    %51 = arith.addf %49, %50 : vector<8x32xf32>
    %52 = vector.shape_cast %51 : vector<8x32xf32> to vector<1x8x32xf32>
    %53 = vector.shape_cast %52 : vector<1x8x32xf32> to vector<1x8x32xf32>
    %54 = vector.broadcast %53 : vector<1x8x32xf32> to vector<4x8x32xf32>
    "tpu.trace_start"() <{level = 10 : i32, message = "hsd,hdk->hsk"}> : () -> ()
    %cst_51 = arith.constant dense<0.000000e+00> : vector<4x8x8xf32>
    %55 = tpu.matmul %54, %18, %cst_51 {dimension_numbers = #tpu.dot_dimension_numbers<[2], [1], [1], [2], [0, 0, 0, 1, 1, 2], [0], [0]>} : vector<4x8x32xf32>, vector<4x32x8xf32>, vector<4x8x8xf32> -> vector<4x8x8xf32>
    "tpu.trace_stop"() : () -> ()
    %56 = vector.broadcast %21 : vector<4x1x8xf32> to vector<4x8x8xf32>
    %57 = arith.addf %55, %56 : vector<4x8x8xf32>
    "tpu.trace_start"() <{level = 10 : i32, message = "hsd,hdk->hsk"}> : () -> ()
    %cst_52 = arith.constant dense<0.000000e+00> : vector<4x8x8xf32>
    %58 = tpu.matmul %54, %19, %cst_52 {dimension_numbers = #tpu.dot_dimension_numbers<[2], [1], [1], [2], [0, 0, 0, 1, 1, 2], [0], [0]>} : vector<4x8x32xf32>, vector<4x32x8xf32>, vector<4x8x8xf32> -> vector<4x8x8xf32>
    "tpu.trace_stop"() : () -> ()
    %59 = vector.broadcast %22 : vector<4x1x8xf32> to vector<4x8x8xf32>
    %60 = arith.addf %58, %59 : vector<4x8x8xf32>
    "tpu.trace_start"() <{level = 10 : i32, message = "hsd,hdk->hsk"}> : () -> ()
    %cst_53 = arith.constant dense<0.000000e+00> : vector<4x8x8xf32>
    %61 = tpu.matmul %54, %20, %cst_53 {dimension_numbers = #tpu.dot_dimension_numbers<[2], [1], [1], [2], [0, 0, 0, 1, 1, 2], [0], [0]>} : vector<4x8x32xf32>, vector<4x32x8xf32>, vector<4x8x8xf32> -> vector<4x8x8xf32>
    "tpu.trace_stop"() : () -> ()
    %62 = vector.broadcast %23 : vector<4x1x8xf32> to vector<4x8x8xf32>
    %63 = arith.addf %61, %62 : vector<4x8x8xf32>
    %cst_54 = arith.constant 0.353553385 : f32
    %64 = vector.broadcast %cst_54 : f32 to vector<4x8x8xf32>
    %65 = arith.mulf %57, %64 : vector<4x8x8xf32>
    "tpu.trace_start"() <{level = 10 : i32, message = "hqd,hkd->hqk"}> : () -> ()
    %cst_55 = arith.constant dense<0.000000e+00> : vector<4x8x8xf32>
    %66 = tpu.matmul %65, %60, %cst_55 {dimension_numbers = #tpu.dot_dimension_numbers<[2], [2], [1], [1], [0, 0, 0, 1, 1, 1], [0], [0]>} : vector<4x8x8xf32>, vector<4x8x8xf32>, vector<4x8x8xf32> -> vector<4x8x8xf32>
    "tpu.trace_stop"() : () -> ()
    %67 = vector.shape_cast %13 : vector<8x8xf32> to vector<1x8x8xf32>
    %68 = vector.broadcast %67 : vector<1x8x8xf32> to vector<4x8x8xf32>
    %69 = arith.addf %66, %68 : vector<4x8x8xf32>
    %cst_56 = arith.constant dense<0xFF800000> : vector<4x8xf32>
    %70 = vector.multi_reduction <maximumf>, %69, %cst_56 [2] : vector<4x8x8xf32> to vector<4x8xf32>
    %71 = vector.shape_cast %70 : vector<4x8xf32> to vector<4x8x1xf32>
    %72 = vector.broadcast %71 : vector<4x8x1xf32> to vector<4x8x8xf32>
    %73 = arith.subf %69, %72 : vector<4x8x8xf32>
    %74 = math.exp %73 : vector<4x8x8xf32>
    %cst_57 = arith.constant dense<0.000000e+00> : vector<4x8xf32>
    %75 = vector.multi_reduction <add>, %74, %cst_57 [2] : vector<4x8x8xf32> to vector<4x8xf32>
    %76 = vector.shape_cast %75 : vector<4x8xf32> to vector<4x8x1xf32>
    %77 = tpu.reciprocal %76 {approx = true} : vector<4x8x1xf32> -> vector<4x8x1xf32>
    %78 = vector.broadcast %77 : vector<4x8x1xf32> to vector<4x8x8xf32>
    %79 = arith.mulf %74, %78 : vector<4x8x8xf32>
    "tpu.trace_start"() <{level = 10 : i32, message = "hqk,hkd->hqd"}> : () -> ()
    %cst_58 = arith.constant dense<0.000000e+00> : vector<4x8x8xf32>
    %80 = tpu.matmul %79, %63, %cst_58 {dimension_numbers = #tpu.dot_dimension_numbers<[2], [1], [1], [2], [0, 0, 0, 1, 1, 2], [0], [0]>} : vector<4x8x8xf32>, vector<4x8x8xf32>, vector<4x8x8xf32> -> vector<4x8x8xf32>
    "tpu.trace_stop"() : () -> ()
    "tpu.trace_start"() <{level = 10 : i32, message = "hqd,hdk->hqk"}> : () -> ()
    %cst_59 = arith.constant dense<0.000000e+00> : vector<4x8x32xf32>
    %81 = tpu.matmul %80, %24, %cst_59 {dimension_numbers = #tpu.dot_dimension_numbers<[2], [1], [1], [2], [0, 0, 0, 1, 1, 2], [0], [0]>} : vector<4x8x8xf32>, vector<4x8x32xf32>, vector<4x8x32xf32> -> vector<4x8x32xf32>
    "tpu.trace_stop"() : () -> ()
    %cst_60 = arith.constant dense<0.000000e+00> : vector<8x32xf32>
    %82 = vector.multi_reduction <add>, %81, %cst_60 [0] : vector<4x8x32xf32> to vector<8x32xf32>
    %83 = vector.broadcast %25 : vector<1x32xf32> to vector<8x32xf32>
    %84 = arith.addf %82, %83 : vector<8x32xf32>
    %85 = arith.addf %1, %84 : vector<8x32xf32>
    %cst_61 = arith.constant dense<0.000000e+00> : vector<8xf32>
    %86 = vector.multi_reduction <add>, %85, %cst_61 [1] : vector<8x32xf32> to vector<8xf32>
    %87 = vector.shape_cast %86 : vector<8xf32> to vector<8x1xf32>
    %cst_62 = arith.constant 3.200000e+01 : f32
    %88 = vector.broadcast %cst_62 : f32 to vector<8x1xf32>
    %89 = arith.divf %87, %88 : vector<8x1xf32>
    %90 = vector.broadcast %89 : vector<8x1xf32> to vector<8x32xf32>
    %91 = arith.subf %85, %90 : vector<8x32xf32>
    %92 = arith.mulf %91, %91 : vector<8x32xf32>
    %cst_63 = arith.constant dense<0.000000e+00> : vector<8xf32>
    %93 = vector.multi_reduction <add>, %92, %cst_63 [1] : vector<8x32xf32> to vector<8xf32>
    %94 = vector.shape_cast %93 : vector<8xf32> to vector<8x1xf32>
    %cst_64 = arith.constant 3.200000e+01 : f32
    %95 = vector.broadcast %cst_64 : f32 to vector<8x1xf32>
    %96 = arith.divf %94, %95 : vector<8x1xf32>
    %97 = vector.broadcast %89 : vector<8x1xf32> to vector<8x32xf32>
    %98 = arith.subf %85, %97 : vector<8x32xf32>
    %cst_65 = arith.constant 9.99999974E-6 : f32
    %99 = vector.broadcast %cst_65 : f32 to vector<8x1xf32>
    %100 = arith.addf %96, %99 : vector<8x1xf32>
    %101 = math.rsqrt %100 : vector<8x1xf32>
    %102 = vector.broadcast %101 : vector<8x1xf32> to vector<8x32xf32>
    %103 = arith.mulf %98, %102 : vector<8x32xf32>
    %104 = vector.broadcast %16 : vector<1x32xf32> to vector<8x32xf32>
    %105 = arith.mulf %103, %104 : vector<8x32xf32>
    %106 = vector.broadcast %17 : vector<1x32xf32> to vector<8x32xf32>
    %107 = arith.addf %105, %106 : vector<8x32xf32>
    %cst_66 = arith.constant dense<0.000000e+00> : vector<8x64xf32>
    %108 = tpu.matmul %107, %26, %cst_66 {dimension_numbers = #tpu.dot_dimension_numbers<[1], [0], [0], [1], [0, 0, 1, 1], [], []>} : vector<8x32xf32>, vector<32x64xf32>, vector<8x64xf32> -> vector<8x64xf32>
    %109 = vector.broadcast %27 : vector<1x64xf32> to vector<8x64xf32>
    %110 = arith.addf %108, %109 : vector<8x64xf32>
    %cst_67 = arith.constant 0.000000e+00 : f32
    %111 = vector.broadcast %cst_67 : f32 to vector<8x64xf32>
    %112 = arith.maximumf %110, %111 : vector<8x64xf32>
    %cst_68 = arith.constant dense<0.000000e+00> : vector<8x32xf32>
    %113 = tpu.matmul %112, %28, %cst_68 {dimension_numbers = #tpu.dot_dimension_numbers<[1], [0], [0], [1], [0, 0, 1, 1], [], []>} : vector<8x64xf32>, vector<64x32xf32>, vector<8x32xf32> -> vector<8x32xf32>
    %114 = arith.addf %85, %113 : vector<8x32xf32>
    %115 = vector.broadcast %29 : vector<1x32xf32> to vector<8x32xf32>
    %116 = arith.addf %114, %115 : vector<8x32xf32>
    %cst_69 = arith.constant dense<0.000000e+00> : vector<8xf32>
    %117 = vector.multi_reduction <add>, %116, %cst_69 [1] : vector<8x32xf32> to vector<8xf32>
    %118 = vector.shape_cast %117 : vector<8xf32> to vector<8x1xf32>
    %cst_70 = arith.constant 3.200000e+01 : f32
    %119 = vector.broadcast %cst_70 : f32 to vector<8x1xf32>
    %120 = arith.divf %118, %119 : vector<8x1xf32>
    %121 = vector.broadcast %120 : vector<8x1xf32> to vector<8x32xf32>
    %122 = arith.subf %116, %121 : vector<8x32xf32>
    %123 = arith.mulf %122, %122 : vector<8x32xf32>
    %cst_71 = arith.constant dense<0.000000e+00> : vector<8xf32>
    %124 = vector.multi_reduction <add>, %123, %cst_71 [1] : vector<8x32xf32> to vector<8xf32>
    %125 = vector.shape_cast %124 : vector<8xf32> to vector<8x1xf32>
    %cst_72 = arith.constant 3.200000e+01 : f32
    %126 = vector.broadcast %cst_72 : f32 to vector<8x1xf32>
    %127 = arith.divf %125, %126 : vector<8x1xf32>
    %128 = vector.broadcast %120 : vector<8x1xf32> to vector<8x32xf32>
    %129 = arith.subf %116, %128 : vector<8x32xf32>
    %cst_73 = arith.constant 9.99999974E-6 : f32
    %130 = vector.broadcast %cst_73 : f32 to vector<8x1xf32>
    %131 = arith.addf %127, %130 : vector<8x1xf32>
    %132 = math.rsqrt %131 : vector<8x1xf32>
    %133 = vector.broadcast %132 : vector<8x1xf32> to vector<8x32xf32>
    %134 = arith.mulf %129, %133 : vector<8x32xf32>
    %135 = vector.broadcast %14 : vector<1x32xf32> to vector<8x32xf32>
    %136 = arith.mulf %134, %135 : vector<8x32xf32>
    %137 = vector.broadcast %15 : vector<1x32xf32> to vector<8x32xf32>
    %138 = arith.addf %136, %137 : vector<8x32xf32>
    %139 = vector.shape_cast %138 : vector<8x32xf32> to vector<1x8x32xf32>
    %140 = vector.shape_cast %139 : vector<1x8x32xf32> to vector<1x8x32xf32>
    %141 = vector.broadcast %140 : vector<1x8x32xf32> to vector<4x8x32xf32>
    "tpu.trace_start"() <{level = 10 : i32, message = "hsd,hdk->hsk"}> : () -> ()
    %cst_74 = arith.constant dense<0.000000e+00> : vector<4x8x8xf32>
    %142 = tpu.matmul %141, %18, %cst_74 {dimension_numbers = #tpu.dot_dimension_numbers<[2], [1], [1], [2], [0, 0, 0, 1, 1, 2], [0], [0]>} : vector<4x8x32xf32>, vector<4x32x8xf32>, vector<4x8x8xf32> -> vector<4x8x8xf32>
    "tpu.trace_stop"() : () -> ()
    %143 = vector.broadcast %21 : vector<4x1x8xf32> to vector<4x8x8xf32>
    %144 = arith.addf %142, %143 : vector<4x8x8xf32>
    "tpu.trace_start"() <{level = 10 : i32, message = "hsd,hdk->hsk"}> : () -> ()
    %cst_75 = arith.constant dense<0.000000e+00> : vector<4x8x8xf32>
    %145 = tpu.matmul %141, %19, %cst_75 {dimension_numbers = #tpu.dot_dimension_numbers<[2], [1], [1], [2], [0, 0, 0, 1, 1, 2], [0], [0]>} : vector<4x8x32xf32>, vector<4x32x8xf32>, vector<4x8x8xf32> -> vector<4x8x8xf32>
    "tpu.trace_stop"() : () -> ()
    %146 = vector.broadcast %22 : vector<4x1x8xf32> to vector<4x8x8xf32>
    %147 = arith.addf %145, %146 : vector<4x8x8xf32>
    "tpu.trace_start"() <{level = 10 : i32, message = "hsd,hdk->hsk"}> : () -> ()
    %cst_76 = arith.constant dense<0.000000e+00> : vector<4x8x8xf32>
    %148 = tpu.matmul %141, %20, %cst_76 {dimension_numbers = #tpu.dot_dimension_numbers<[2], [1], [1], [2], [0, 0, 0, 1, 1, 2], [0], [0]>} : vector<4x8x32xf32>, vector<4x32x8xf32>, vector<4x8x8xf32> -> vector<4x8x8xf32>
    "tpu.trace_stop"() : () -> ()
    %149 = vector.broadcast %23 : vector<4x1x8xf32> to vector<4x8x8xf32>
    %150 = arith.addf %148, %149 : vector<4x8x8xf32>
    %cst_77 = arith.constant 0.353553385 : f32
    %151 = vector.broadcast %cst_77 : f32 to vector<4x8x8xf32>
    %152 = arith.mulf %144, %151 : vector<4x8x8xf32>
    "tpu.trace_start"() <{level = 10 : i32, message = "hqd,hkd->hqk"}> : () -> ()
    %cst_78 = arith.constant dense<0.000000e+00> : vector<4x8x8xf32>
    %153 = tpu.matmul %152, %147, %cst_78 {dimension_numbers = #tpu.dot_dimension_numbers<[2], [2], [1], [1], [0, 0, 0, 1, 1, 1], [0], [0]>} : vector<4x8x8xf32>, vector<4x8x8xf32>, vector<4x8x8xf32> -> vector<4x8x8xf32>
    "tpu.trace_stop"() : () -> ()
    %154 = vector.shape_cast %13 : vector<8x8xf32> to vector<1x8x8xf32>
    %155 = vector.broadcast %154 : vector<1x8x8xf32> to vector<4x8x8xf32>
    %156 = arith.addf %153, %155 : vector<4x8x8xf32>
    %cst_79 = arith.constant dense<0xFF800000> : vector<4x8xf32>
    %157 = vector.multi_reduction <maximumf>, %156, %cst_79 [2] : vector<4x8x8xf32> to vector<4x8xf32>
    %158 = vector.shape_cast %157 : vector<4x8xf32> to vector<4x8x1xf32>
    %159 = vector.broadcast %158 : vector<4x8x1xf32> to vector<4x8x8xf32>
    %160 = arith.subf %156, %159 : vector<4x8x8xf32>
    %161 = math.exp %160 : vector<4x8x8xf32>
    %cst_80 = arith.constant dense<0.000000e+00> : vector<4x8xf32>
    %162 = vector.multi_reduction <add>, %161, %cst_80 [2] : vector<4x8x8xf32> to vector<4x8xf32>
    %163 = vector.shape_cast %162 : vector<4x8xf32> to vector<4x8x1xf32>
    %164 = tpu.reciprocal %163 {approx = true} : vector<4x8x1xf32> -> vector<4x8x1xf32>
    %165 = vector.broadcast %164 : vector<4x8x1xf32> to vector<4x8x8xf32>
    %166 = arith.mulf %161, %165 : vector<4x8x8xf32>
    "tpu.trace_start"() <{level = 10 : i32, message = "hqk,hkd->hqd"}> : () -> ()
    %cst_81 = arith.constant dense<0.000000e+00> : vector<4x8x8xf32>
    %167 = tpu.matmul %166, %150, %cst_81 {dimension_numbers = #tpu.dot_dimension_numbers<[2], [1], [1], [2], [0, 0, 0, 1, 1, 2], [0], [0]>} : vector<4x8x8xf32>, vector<4x8x8xf32>, vector<4x8x8xf32> -> vector<4x8x8xf32>
    "tpu.trace_stop"() : () -> ()
    "tpu.trace_start"() <{level = 10 : i32, message = "hqd,hdk->hqk"}> : () -> ()
    %cst_82 = arith.constant dense<0.000000e+00> : vector<4x8x32xf32>
    %168 = tpu.matmul %167, %24, %cst_82 {dimension_numbers = #tpu.dot_dimension_numbers<[2], [1], [1], [2], [0, 0, 0, 1, 1, 2], [0], [0]>} : vector<4x8x8xf32>, vector<4x8x32xf32>, vector<4x8x32xf32> -> vector<4x8x32xf32>
    "tpu.trace_stop"() : () -> ()
    %cst_83 = arith.constant dense<0.000000e+00> : vector<8x32xf32>
    %169 = vector.multi_reduction <add>, %168, %cst_83 [0] : vector<4x8x32xf32> to vector<8x32xf32>
    %170 = vector.broadcast %25 : vector<1x32xf32> to vector<8x32xf32>
    %171 = arith.addf %169, %170 : vector<8x32xf32>
    %172 = arith.addf %116, %171 : vector<8x32xf32>
    %cst_84 = arith.constant dense<0.000000e+00> : vector<8xf32>
    %173 = vector.multi_reduction <add>, %172, %cst_84 [1] : vector<8x32xf32> to vector<8xf32>
    %174 = vector.shape_cast %173 : vector<8xf32> to vector<8x1xf32>
    %cst_85 = arith.constant 3.200000e+01 : f32
    %175 = vector.broadcast %cst_85 : f32 to vector<8x1xf32>
    %176 = arith.divf %174, %175 : vector<8x1xf32>
    %177 = vector.broadcast %176 : vector<8x1xf32> to vector<8x32xf32>
    %178 = arith.subf %172, %177 : vector<8x32xf32>
    %179 = arith.mulf %178, %178 : vector<8x32xf32>
    %cst_86 = arith.constant dense<0.000000e+00> : vector<8xf32>
    %180 = vector.multi_reduction <add>, %179, %cst_86 [1] : vector<8x32xf32> to vector<8xf32>
    %181 = vector.shape_cast %180 : vector<8xf32> to vector<8x1xf32>
    %cst_87 = arith.constant 3.200000e+01 : f32
    %182 = vector.broadcast %cst_87 : f32 to vector<8x1xf32>
    %183 = arith.divf %181, %182 : vector<8x1xf32>
    %184 = vector.broadcast %176 : vector<8x1xf32> to vector<8x32xf32>
    %185 = arith.subf %172, %184 : vector<8x32xf32>
    %cst_88 = arith.constant 9.99999974E-6 : f32
    %186 = vector.broadcast %cst_88 : f32 to vector<8x1xf32>
    %187 = arith.addf %183, %186 : vector<8x1xf32>
    %188 = math.rsqrt %187 : vector<8x1xf32>
    %189 = vector.broadcast %188 : vector<8x1xf32> to vector<8x32xf32>
    %190 = arith.mulf %185, %189 : vector<8x32xf32>
    %191 = vector.broadcast %16 : vector<1x32xf32> to vector<8x32xf32>
    %192 = arith.mulf %190, %191 : vector<8x32xf32>
    %193 = vector.broadcast %17 : vector<1x32xf32> to vector<8x32xf32>
    %194 = arith.addf %192, %193 : vector<8x32xf32>
    %cst_89 = arith.constant dense<0.000000e+00> : vector<8x64xf32>
    %195 = tpu.matmul %194, %26, %cst_89 {dimension_numbers = #tpu.dot_dimension_numbers<[1], [0], [0], [1], [0, 0, 1, 1], [], []>} : vector<8x32xf32>, vector<32x64xf32>, vector<8x64xf32> -> vector<8x64xf32>
    %196 = vector.broadcast %27 : vector<1x64xf32> to vector<8x64xf32>
    %197 = arith.addf %195, %196 : vector<8x64xf32>
    %cst_90 = arith.constant 0.000000e+00 : f32
    %198 = vector.broadcast %cst_90 : f32 to vector<8x64xf32>
    %199 = arith.maximumf %197, %198 : vector<8x64xf32>
    %cst_91 = arith.constant dense<0.000000e+00> : vector<8x32xf32>
    %200 = tpu.matmul %199, %28, %cst_91 {dimension_numbers = #tpu.dot_dimension_numbers<[1], [0], [0], [1], [0, 0, 1, 1], [], []>} : vector<8x64xf32>, vector<64x32xf32>, vector<8x32xf32> -> vector<8x32xf32>
    %201 = arith.addf %172, %200 : vector<8x32xf32>
    %202 = vector.broadcast %29 : vector<1x32xf32> to vector<8x32xf32>
    %203 = arith.addf %201, %202 : vector<8x32xf32>
    %c0_92 = arith.constant 0 : index
    %c0_93 = arith.constant 0 : index
    %c0_94 = arith.constant 0 : index
    %204 = vector.load %arg19[%c0_92, %c0_93, %c0_94] : memref<1x8x32xf32, #tpu.memory_space<vmem>>, vector<1x8x32xf32>
    %205 = vector.shape_cast %204 : vector<1x8x32xf32> to vector<8x32xf32>
    %206 = vector.shape_cast %203 : vector<8x32xf32> to vector<1x8x32xf32>
    tpu.vector_store %arg19[%c0_92, %c0_93, %c0_94], %206 {strides = array<i32>} : memref<1x8x32xf32, #tpu.memory_space<vmem>>, vector<1x8x32xf32>,
    return
  }
  func.func @transform_0(%arg0: i32) -> (i32, i32, i32) {
    %c0_i32 = arith.constant 0 : i32
    %c0_i32_0 = arith.constant 0 : i32
    %c0_i32_1 = arith.constant 0 : i32
    return %arg0, %c0_i32, %c0_i32_0 : i32, i32, i32
  }
  func.func @transform_1(%arg0: i32) -> (i32, i32, i32) {
    %c0_i32 = arith.constant 0 : i32
    %c0_i32_0 = arith.constant 0 : i32
    %c0_i32_1 = arith.constant 0 : i32
    return %arg0, %c0_i32, %c0_i32_0 : i32, i32, i32
  }
  func.func @transform_2(%arg0: i32) -> (i32, i32) {
    %c0_i32 = arith.constant 0 : i32
    %c0_i32_0 = arith.constant 0 : i32
    %c0_i32_1 = arith.constant 0 : i32
    return %c0_i32, %c0_i32_0 : i32, i32
  }
  func.func @transform_3(%arg0: i32) -> (i32, i32) {
    %c0_i32 = arith.constant 0 : i32
    %c0_i32_0 = arith.constant 0 : i32
    %c0_i32_1 = arith.constant 0 : i32
    return %c0_i32, %c0_i32_0 : i32, i32
  }
  func.func @transform_4(%arg0: i32) -> (i32, i32, i32) {
    %c0_i32 = arith.constant 0 : i32
    %c0_i32_0 = arith.constant 0 : i32
    %c0_i32_1 = arith.constant 0 : i32
    %c0_i32_2 = arith.constant 0 : i32
    return %c0_i32, %c0_i32_0, %c0_i32_1 : i32, i32, i32
  }
  func.func @transform_5(%arg0: i32) -> (i32, i32, i32) {
    %c0_i32 = arith.constant 0 : i32
    %c0_i32_0 = arith.constant 0 : i32
    %c0_i32_1 = arith.constant 0 : i32
    %c0_i32_2 = arith.constant 0 : i32
    return %c0_i32, %c0_i32_0, %c0_i32_1 : i32, i32, i32
  }
  func.func @transform_6(%arg0: i32) -> (i32, i32, i32) {
    %c0_i32 = arith.constant 0 : i32
    %c0_i32_0 = arith.constant 0 : i32
    %c0_i32_1 = arith.constant 0 : i32
    %c0_i32_2 = arith.constant 0 : i32
    return %c0_i32, %c0_i32_0, %c0_i32_1 : i32, i32, i32
  }
  func.func @transform_7(%arg0: i32) -> (i32, i32, i32) {
    %c0_i32 = arith.constant 0 : i32
    %c0_i32_0 = arith.constant 0 : i32
    %c0_i32_1 = arith.constant 0 : i32
    %c0_i32_2 = arith.constant 0 : i32
    return %c0_i32, %c0_i32_0, %c0_i32_1 : i32, i32, i32
  }
  func.func @transform_8(%arg0: i32) -> (i32, i32, i32) {
    %c0_i32 = arith.constant 0 : i32
    %c0_i32_0 = arith.constant 0 : i32
    %c0_i32_1 = arith.constant 0 : i32
    %c0_i32_2 = arith.constant 0 : i32
    return %c0_i32, %c0_i32_0, %c0_i32_1 : i32, i32, i32
  }
  func.func @transform_9(%arg0: i32) -> (i32, i32, i32) {
    %c0_i32 = arith.constant 0 : i32
    %c0_i32_0 = arith.constant 0 : i32
    %c0_i32_1 = arith.constant 0 : i32
    %c0_i32_2 = arith.constant 0 : i32
    return %c0_i32, %c0_i32_0, %c0_i32_1 : i32, i32, i32
  }
  func.func @transform_10(%arg0: i32) -> (i32, i32, i32) {
    %c0_i32 = arith.constant 0 : i32
    %c0_i32_0 = arith.constant 0 : i32
    %c0_i32_1 = arith.constant 0 : i32
    %c0_i32_2 = arith.constant 0 : i32
    return %c0_i32, %c0_i32_0, %c0_i32_1 : i32, i32, i32
  }
  func.func @transform_11(%arg0: i32) -> (i32, i32) {
    %c0_i32 = arith.constant 0 : i32
    %c0_i32_0 = arith.constant 0 : i32
    %c0_i32_1 = arith.constant 0 : i32
    return %c0_i32, %c0_i32_0 : i32, i32
  }
  func.func @transform_12(%arg0: i32) -> (i32, i32) {
    %c0_i32 = arith.constant 0 : i32
    %c0_i32_0 = arith.constant 0 : i32
    %c0_i32_1 = arith.constant 0 : i32
    return %c0_i32, %c0_i32_0 : i32, i32
  }
  func.func @transform_13(%arg0: i32) -> (i32, i32) {
    %c0_i32 = arith.constant 0 : i32
    %c0_i32_0 = arith.constant 0 : i32
    %c0_i32_1 = arith.constant 0 : i32
    return %c0_i32, %c0_i32_0 : i32, i32
  }
  func.func @transform_14(%arg0: i32) -> (i32, i32) {
    %c0_i32 = arith.constant 0 : i32
    %c0_i32_0 = arith.constant 0 : i32
    %c0_i32_1 = arith.constant 0 : i32
    return %c0_i32, %c0_i32_0 : i32, i32
  }
  func.func @transform_15(%arg0: i32) -> (i32, i32) {
    %c0_i32 = arith.constant 0 : i32
    %c0_i32_0 = arith.constant 0 : i32
    %c0_i32_1 = arith.constant 0 : i32
    return %c0_i32, %c0_i32_0 : i32, i32
  }
  func.func @transform_16(%arg0: i32) -> (i32, i32) {
    %c0_i32 = arith.constant 0 : i32
    %c0_i32_0 = arith.constant 0 : i32
    %c0_i32_1 = arith.constant 0 : i32
    return %c0_i32, %c0_i32_0 : i32, i32
  }
  func.func @transform_17(%arg0: i32) -> (i32, i32) {
    %c0_i32 = arith.constant 0 : i32
    %c0_i32_0 = arith.constant 0 : i32
    %c0_i32_1 = arith.constant 0 : i32
    return %c0_i32, %c0_i32_0 : i32, i32
  }
  func.func @transform_18(%arg0: i32) -> (i32, i32, i32) {
    %c0_i32 = arith.constant 0 : i32
    %c0_i32_0 = arith.constant 0 : i32
    %c0_i32_1 = arith.constant 0 : i32
    return %arg0, %c0_i32, %c0_i32_0 : i32, i32, i32
  }
}

</mosaic_0001>

<bundles_post_ra>
// kernel: tpu_custom_call.1
= control target key start
LH: loop header
LB: loop body
LE: loop exit
PB: predicated region body
PF: predicated region fallthrough
CT: control target
= control target key end

     0   :  { %s6891_s0 = inlined_call_operand.vmem [shape: f32[2,8,32], index: 0, kind: input, shape index: {}]   ;;  %s6892_s1 = inlined_call_operand.vmem [shape: f32[2,1,8], index: 1, kind: input, shape index: {}]   ;;  %s6893_s2 = inlined_call_operand.vmem [shape: f32[1,32], index: 2, kind: input, shape index: {}]   ;;  %s6894_s3 = inlined_call_operand.vmem [shape: f32[1,32], index: 3, kind: input, shape index: {}]   ;;  %s6895_s4 = inlined_call_operand.vmem [shape: f32[4,32,8], index: 4, kind: input, shape index: {}]   ;;  %s6896_s5 = inlined_call_operand.vmem [shape: f32[4,1,8], index: 5, kind: input, shape index: {}]   ;;  %s6897_s6 = inlined_call_operand.vmem [shape: f32[4,32,8], index: 6, kind: input, shape index: {}]   ;;  %s6898_s7 = inlined_call_operand.vmem [shape: f32[4,1,8], index: 7, kind: input, shape index: {}]   ;;  %s6899_s8 = inlined_call_operand.vmem [shape: f32[4,32,8], index: 8, kind: input, shape index: {}]   ;;  %s6900_s9 = inlined_call_operand.vmem [shape: f32[4,1,8], index: 9, kind: input, shape index: {}]   ;;  %s6901_s10 = inlined_call_operand.vmem [shape: f32[4,8,32], index: 10, kind: input, shape index: {}]   ;;  %s6902_s11 = inlined_call_operand.vmem [shape: f32[1,32], index: 11, kind: input, shape index: {}]   ;;  %s6903_s12 = inlined_call_operand.vmem [shape: f32[1,32], index: 12, kind: input, shape index: {}]   ;;  %s6904_s13 = inlined_call_operand.vmem [shape: f32[1,32], index: 13, kind: input, shape index: {}]   ;;  %s6905_s14 = inlined_call_operand.vmem [shape: f32[32,64], index: 14, kind: input, shape index: {}]   ;;  %s6906_s15 = inlined_call_operand.vmem [shape: f32[1,64], index: 15, kind: input, shape index: {}]   ;;  %s6907_s16 = inlined_call_operand.vmem [shape: f32[64,32], index: 16, kind: input, shape index: {}]   ;;  %s6908_s17 = inlined_call_operand.vmem [shape: f32[1,32], index: 17, kind: input, shape index: {}]   ;;  %s6909_s18 = inlined_call_operand.hbm [shape: f32[2,8,32], index: 18, kind: output, shape index: {}]  }
   0x1   :  { %6920 = sst [smem:[#allocation11_spill]] %s6891_s0 }
   0x2   :  { %6921 = sst [smem:[#allocation12_spill]] %s6892_s1 }
   0x3   :  { %6922 = sst [smem:[#allocation13_spill]] %s6893_s2 }
   0x4   :  { %23 = vsyncpa [#allocation3], 0 }
   0x5   :  { %25 = vsyncpa [#allocation3 + $0x1], 0  ;;  %s5977_s27 = smov 0   ;;  %s5979_s28 = smov 0  }
   0x6   :  { %s5981_s29 = smov 0   ;;  %s5983_s30 = smov 0  }
   0x7 LB: > { %6923 = sst [smem:[#allocation5_spill]] %s5862_s27  ;;  %s5998_s0 = sadd.s32 4294967295, %s5874_s30   ;;  %s5874_s30 = sphi %s5983_s30, %s6939_s30   ;;  %s5870_s29 = sphi %s5981_s29, %s6941_s29   ;;  %s5866_s28 = sphi %s5979_s28, %s6943_s28   ;;  %s5862_s27 = sphi %s5977_s27, %s6942_s27  }
   0x8   : > { %6924 = sst [smem:[#allocation6_spill]] %s5870_s29  ;;  %s4819_s19 = sadd.s32 4294967294, %s5874_s30  }
   0x9   : > { %6925 = sst [smem:[#allocation7_spill]] %s5874_s30  ;;  %s6002_s1 = sadd.s32 1, %s5874_s30  }
   0xa   : > { %6926 = sst [smem:[#allocation8_spill]] %s6002_s1  ;;  %s426_s20 = sadd.s32 1, %s5870_s29 }
   0xb   : > { %s423_s21 = ssub.s32 %s5874_s30, %s6002_s1  ;;  %p436_p0 = scmp.ne.s32.totalorder %s5870_s29, %s5866_s28 }
   0xc   : > { %p424_p1 = scmp.eq.s32.totalorder %s423_s21, 0  ;;  %p437_p2 = scmp.eq.s32.totalorder %s5998_s0, 1 }
   0xd   : > { %p442_p3 = scmp.ne.s32.totalorder %s5866_s28, %s5862_s27  ;;  %p443_p4 = scmp.eq.s32.totalorder %s4819_s19, 1 }
   0xe   : > { %s6013_s22 = scalar_select %p424_p1, %s5870_s29, %s426_s20  }
   0xf   : > { %p6015_p5 = por %p437_p2, %p436_p0  ;;  %p6019_p6 = por %p443_p4, %p442_p3 }
  0x10   : > { %6927 = sst [smem:[#allocation9_spill]] %s6013_s22  ;;  %p4822_p7 = scmp.ge.s32.totalorder %s5874_s30, 1 }
  0x11   : > { %s6929_s23 = scalar_select %p6019_p6, 1, 0 }
  0x12   : > { %p522_p8 = scmp.lt.s32.totalorder %s5874_s30, 3 }
  0x13   : > { %6930 = sst [smem:[#allocation10_spill]] %s6929_s23 }
  0x14   : > { %p523_p9 = pnand %p4822_p7, %p522_p8 }
  0x15   : > { %p578_p10 = scmp.lt.s32.totalorder (!%p523_p9), %s5998_s0, 1  ;;  %vm684_vm0 = vcmask (!%p523_p9), 261120   ;;  %s6931_s20 = sld [smem:[#allocation11_spill]] (!%p523_p9)  ;;  %v605_v7 = vld [vmem:[%s6895_s4] sm:$0xff] (!%p523_p9)  ;;  %v606_v8 = vld [vmem:[%s6895_s4 + $0x8] sm:$0xff] (!%p523_p9)  ;;  %v6918_v12 = vmov (!%p523_p9), 0.0|0.0  }
  0x16   : > { %526 = sbr.rel (%p523_p9) target bundleno = 4575 (0x11df), region = 92  ;;  %v609_v9 = vld [vmem:[%s6895_s4 + $0x20] sm:$0xff] (!%p523_p9)  ;;  %v6048_v10 = vpack.c.bf16 (!%p523_p9), %v606_v8, %v605_v7  ;;  %v610_v11 = vld [vmem:[%s6895_s4 + $0x28] sm:$0xff] (!%p523_p9)  ;;  %5548 = vmatprep.subr.bf16.mxu0 (!%p523_p9), %v6918_v12  ;;  %5554 = vmatprep.subr.bf16.mxu1 (!%p523_p9), %v6918_v12  ;;  %v607_v14 = vld [vmem:[%s6895_s4 + $0x10] sm:$0xff] (!%p523_p9)  ;;  %vm5877_vm1 = vmmov (!%p523_p9), 0   ;;  %v6916_v20 = vmov (!%p523_p9), 0.0  }
  0x17   : > { %v6055_v13 = vpack.c.bf16 (!%p523_p9), %v610_v11, %v609_v9  ;;  %v608_v15 = vld [vmem:[%s6895_s4 + $0x18] sm:$0xff] (!%p523_p9)  ;;  %v611_v16 = vld [vmem:[%s6895_s4 + $0x30] sm:$0xff] (!%p523_p9)  ;;  %5112 = vmatprep.mubr.msk.f32.mxu0 (!%p523_p9), %vm5877_vm1, %v6916_v20  ;;  %5123 = vmatprep.mubr.msk.f32.mxu1 (!%p523_p9), %vm5877_vm1, %v6916_v20  ;;  %s6932_s26 = sld [smem:[#allocation13_spill]] (!%p523_p9)  ;;  %v613_v26 = vld [vmem:[%s6895_s4 + $0x40] sm:$0xff] (!%p523_p9)  ;;  %vm1632_vm2 = vcmask (!%p523_p9), 64512   ;;  %s6933_s19 = sld [smem:[#allocation12_spill]] (!%p523_p9) }
  0x18   : > { %5550 = vmatpush3.bf16.msra.mxu0 (!%p523_p9), %v6048_v10  ;;  %v6070_v17 = vpack.c.bf16 (!%p523_p9), %v608_v15, %v607_v14  ;;  %v612_v18 = vld [vmem:[%s6895_s4 + $0x38] sm:$0xff] (!%p523_p9)  ;;  %v614_v28 = vld [vmem:[%s6895_s4 + $0x48] sm:$0xff] (!%p523_p9)  ;;  %v617_v29 = vld [vmem:[%s6895_s4 + $0x60] sm:$0xff] (!%p523_p9)  ;;  %vm2687_vm7 = vcmask (!%p523_p9), 523264   ;;  %s5881_s30 = smov (!%p523_p9), [#allocation2]  }
  0x19   : > { %5556 = vmatpush3.bf16.msra.mxu1 (!%p523_p9), %v6055_v13  ;;  %5551 = vmatprep.subr.bf16.mxu0 (!%p523_p9), %v6918_v12  ;;  %v6075_v19 = vpack.c.bf16 (!%p523_p9), %v612_v18, %v611_v16  ;;  %v618_v30 = vld [vmem:[%s6895_s4 + $0x68] sm:$0xff] (!%p523_p9)  ;;  %v6105_v31 = vld [vmem:[%s6894_s3] ss:$0 sm:$0xff] (!%p523_p9)  ;;  %v6108_v33 = vpack.c.bf16 (!%p523_p9), %v614_v28, %v613_v26  ;;  %v615_v35 = vld [vmem:[%s6895_s4 + $0x50] sm:$0xff] (!%p523_p9)  ;;  %s5816_s23 = sshll.u32 (!%p523_p9), %s5881_s30, 4  ;;  %s5817_s23 = int_to_ptr.vmem [resolvable:$false] %s5816_s23 }
  0x1a   : > { %5557 = vmatprep.subr.bf16.mxu1 (!%p523_p9), %v6918_v12  ;;  %v6110_v34 = vpack.c.bf16 (!%p523_p9), %v618_v30, %v617_v29  ;;  %v616_v37 = vld [vmem:[%s6895_s4 + $0x58] sm:$0xff] (!%p523_p9)  ;;  %v619_v38 = vld [vmem:[%s6895_s4 + $0x70] sm:$0xff] (!%p523_p9)  ;;  %v621_v42 = vld [vmem:[%s6897_s6] sm:$0xff] (!%p523_p9) }
  0x1b   : > { %v620_v39 = vld [vmem:[%s6895_s4 + $0x78] sm:$0xff] (!%p523_p9)  ;;  %v6133_v40 = vpack.c.bf16 (!%p523_p9), %v616_v37, %v615_v35  ;;  %v622_v43 = vld [vmem:[%s6897_s6 + $0x8] sm:$0xff] (!%p523_p9)  ;;  %v625_v44 = vld [vmem:[%s6897_s6 + $0x20] sm:$0xff] (!%p523_p9) }
  0x1c   : > { %5553 = vmatpush3.bf16.msra.mxu0 (!%p523_p9), %v6070_v17  ;;  %v6135_v41 = vpack.c.bf16 (!%p523_p9), %v620_v39, %v619_v38  ;;  %v626_v45 = vld [vmem:[%s6897_s6 + $0x28] sm:$0xff] (!%p523_p9)  ;;  %v6157_v46 = vpack.c.bf16 (!%p523_p9), %v622_v43, %v621_v42  ;;  %v623_v48 = vld [vmem:[%s6897_s6 + $0x10] sm:$0xff] (!%p523_p9)  ;;  %v624_v49 = vld [vmem:[%s6897_s6 + $0x18] sm:$0xff] (!%p523_p9) }
  0x1d   : > { %s6027_s24 = scalar_select %p578_p10, %s5998_s0, 1  ;;  %5559 = vmatpush3.bf16.msra.mxu1 %v6075_v19  ;;  %5560 = vmatprep.subr.bf16.mxu0 %v6918_v12  ;;  %v6088_v25 = vld [vmem:[%s6932_s26] ss:$0 sm:$0xff]  ;;  %v6159_v47 = vpack.c.bf16 %v626_v45, %v625_v44  ;;  %v627_v50 = vld [vmem:[%s6897_s6 + $0x30] sm:$0xff]  ;;  %v628_v51 = vld [vmem:[%s6897_s6 + $0x38] sm:$0xff]  ;;  %v6181_v52 = vpack.c.bf16 %v624_v49, %v623_v48 }
  0x1e   : > { %5566 = vmatprep.subr.bf16.mxu1 %v6918_v12  ;;  %v6183_v53 = vpack.c.bf16 %v628_v51, %v627_v50  ;;  %v629_v54 = vld [vmem:[%s6897_s6 + $0x40] sm:$0xff]  ;;  %v630_v55 = vld [vmem:[%s6897_s6 + $0x48] sm:$0xff]  ;;  %v631_v60 = vld [vmem:[%s6897_s6 + $0x50] sm:$0xff] }
  0x1f   : > { %s4824_s25 = sshll.u32 %s6027_s24, 3  ;;  %v633_v56 = vld [vmem:[%s6897_s6 + $0x60] sm:$0xff]  ;;  %v634_v57 = vld [vmem:[%s6897_s6 + $0x68] sm:$0xff]  ;;  %v6205_v58 = vpack.c.bf16 %v630_v55, %v629_v54  ;;  %v632_v61 = vld [vmem:[%s6897_s6 + $0x58] sm:$0xff] }
  0x20   : > { %s581_s21 = scalar_lea.vmem %s6931_s20, %s4824_s25  ;;  %v6207_v59 = vpack.c.bf16 %v634_v57, %v633_v56  ;;  %v635_v62 = vld [vmem:[%s6897_s6 + $0x70] sm:$0xff]  ;;  %v636_v63 = vld [vmem:[%s6897_s6 + $0x78] sm:$0xff]  ;;  %v6350_v50 = vld [vmem:[%s6896_s5] ss:$0 sm:$0xff]  ;;  %s584_s20 = scalar_lea.vmem %s6933_s19, %s6027_s24 }
  0x21   : > { %v6033_v0 = vld [vmem:[%s581_s21] sm:$0xff]  ;;  %v639_v9 = vld [vmem:[%s6899_s8 + $0x10] sm:$0xff]  ;;  %v640_v11 = vld [vmem:[%s6899_s8 + $0x18] sm:$0xff]  ;;  %s575_s19 = sand.u32 1, %s5866_s28   ;;  %s4905_s24 = sshll.u32 %s5998_s0, 7 }
  0x22   : > { %v685_v1 = vsel %vm684_vm0, %v6033_v0, 0.0  ;;  %v643_v14 = vld [vmem:[%s6899_s8 + $0x30] sm:$0xff]  ;;  %v644_v15 = vld [vmem:[%s6899_s8 + $0x38] sm:$0xff]  ;;  %v6277_v16 = vpack.c.bf16 %v640_v11, %v639_v9  ;;  %v6361_v56 = vld [vmem:[%s6896_s5 + $0x1] ss:$0 sm:$0xff]  ;;  %s6848_s1 = scalar_lea.hbm %s6909_s18, %s4905_s24  ;;  %s4738_s27 = scalar_lea.sflag [#allocation3], %s575_s19 }
  0x23   : > { %686 = vadd.xlane.f32.xlu0 %v685_v1  ;;  %v6229_v1 = vpack.c.bf16 %v632_v61, %v631_v60  ;;  %v6279_v18 = vpack.c.bf16 %v644_v15, %v643_v14  ;;  %v647_v28 = vld [vmem:[%s6899_s8 + $0x50] sm:$0xff]  ;;  %v648_v29 = vld [vmem:[%s6899_s8 + $0x58] sm:$0xff]  ;;  %v6387_v9 = vld [vmem:[%s6898_s7 + $0x2] ss:$0 sm:$0xff]  ;;  %s5818_s25 = scalar_lea.vmem %s5817_s23, 256 }
  0x24   : > { %v651_v30 = vld [vmem:[%s6899_s8 + $0x70] sm:$0xff]  ;;  %v6325_v35 = vpack.c.bf16 %v648_v29, %v647_v28  ;;  %v6392_v11 = vld [vmem:[%s6898_s7 + $0x3] ss:$0 sm:$0xff] }
  0xb0   : > { %v687_v2 = vpop.xlane.xlu0 %686 }
  0xb1   : > { %v689_v3 = vmul.f32 0.03125, %v687_v2  ;;  %v6231_v2 = vpack.c.bf16 %v636_v63, %v635_v62  ;;  %v6367_v62 = vld [vmem:[%s6898_s7 + $0x1] ss:$0 sm:$0xff] }
  0xb3   : > { %v690_v4 = vsub.f32 %v6033_v0, %v689_v3  ;;  %v637_v3 = vld [vmem:[%s6899_s8] sm:$0xff] }
  0xb5   : > { %v691_v5 = vmul.f32 %v690_v4, %v690_v4 }
  0xb7   : > { %v692_v6 = vsel %vm684_vm0, %v691_v5, 0.0  ;;  %v641_v5 = vld [vmem:[%s6899_s8 + $0x20] sm:$0xff] }
  0xb8   : > { %693 = vadd.xlane.f32.xlu0 %v692_v6  ;;  %v642_v6 = vld [vmem:[%s6899_s8 + $0x28] sm:$0xff] }
  0xb9   : > { %v6255_v8 = vpack.c.bf16 %v642_v6, %v641_v5  ;;  %v6380_v5 = vld [vmem:[%s6896_s5 + $0x3] ss:$0 sm:$0xff] }
 0x145   : > { %v694_v21 = vpop.xlane.xlu0 %693 }
 0x146   : > { %v695_v22 = vmul.f32 0.03125, %v694_v21  ;;  %v645_v21 = vld [vmem:[%s6899_s8 + $0x40] sm:$0xff] }
 0x148   : > { %v696_v23 = vadd.f32 1e-05, %v695_v22  ;;  %v646_v22 = vld [vmem:[%s6899_s8 + $0x48] sm:$0xff] }
 0x149   : > { %v6301_v26 = vpack.c.bf16 %v646_v22, %v645_v21 }
 0x14a   : > { %5772 = vrsqrt.f32 %v696_v23  ;;  %v649_v23 = vld [vmem:[%s6899_s8 + $0x60] sm:$0xff] }
 0x154   : > { %v5773_v24 = vpop.eup %5772 }
 0x155   : > { %v698_v27 = vmul.f32 %v5773_v24, %v690_v4  ;;  %v638_v4 = vld [vmem:[%s6899_s8 + $0x8] sm:$0xff] }
 0x156   : > { %v6253_v7 = vpack.c.bf16 %v638_v4, %v637_v3  ;;  %v650_v24 = vld [vmem:[%s6899_s8 + $0x68] sm:$0xff]  ;;  %v6375_v4 = vld [vmem:[%s6896_s5 + $0x2] ss:$0 sm:$0xff] }
 0x157   : > { %v705_v32 = vmul.f32 %v6088_v25, %v698_v27  ;;  %v6303_v27 = vpack.c.bf16 %v650_v24, %v649_v23 }
 0x159   : > { %v6116_v36 = vadd.f32 %v6105_v31, %v705_v32  ;;  %v652_v32 = vld [vmem:[%s6899_s8 + $0x78] sm:$0xff] }
 0x15a   : > { %v6327_v37 = vpack.c.bf16 %v652_v32, %v651_v30 }
 0x15b   : > { %5113 = vmatmul.mubr.msk.f32.vlgmr.msra.gmra.mrb[0].mxu0 %vm684_vm0, %v6116_v36  ;;  %5124 = vmatmul.mubr.msk.f32.vlgmr.msra.gmra.mrb[0].mxu1 %vm684_vm0, %v6116_v36 }
 0x15c   : > { %5562 = vmatpush3.bf16.msra.mxu0 %v6108_v33  ;;  %5568 = vmatpush3.bf16.msra.mxu1 %v6110_v34 }
 0x15d   : > { %5563 = vmatprep.subr.bf16.mxu0 %v6918_v12  ;;  %5569 = vmatprep.subr.bf16.mxu1 %v6918_v12 }
 0x15e   : > { %5134 = vmatprep.mubr.msk.f32.mxu0 %vm5877_vm1, %v6916_v20  ;;  %5145 = vmatprep.mubr.msk.f32.mxu1 %vm5877_vm1, %v6916_v20 }
 0x160   : > { %5565 = vmatpush3.bf16.msra.mxu0 %v6133_v40  ;;  %5571 = vmatpush3.bf16.msra.mxu1 %v6135_v41 }
 0x161   : > { %5572 = vmatprep.subr.bf16.mxu0 %v6918_v12  ;;  %5578 = vmatprep.subr.bf16.mxu1 %v6918_v12 }
 0x163   : > { %5135 = vmatmul.mubr.msk.f32.vlgmr.msra.gmra.mrb[2].mxu0 %vm684_vm0, %v6116_v36  ;;  %5146 = vmatmul.mubr.msk.f32.vlgmr.msra.gmra.mrb[2].mxu1 %vm684_vm0, %v6116_v36 }
 0x164   : > { %5574 = vmatpush3.bf16.msra.mxu0 %v6157_v46  ;;  %5580 = vmatpush3.bf16.msra.mxu1 %v6159_v47 }
 0x165   : > { %5575 = vmatprep.subr.bf16.mxu0 %v6918_v12  ;;  %5581 = vmatprep.subr.bf16.mxu1 %v6918_v12 }
 0x166   : > { %5156 = vmatprep.mubr.msk.f32.mxu0 %vm5877_vm1, %v6916_v20  ;;  %5167 = vmatprep.mubr.msk.f32.mxu1 %vm5877_vm1, %v6916_v20 }
 0x168   : > { %5577 = vmatpush3.bf16.msra.mxu0 %v6181_v52  ;;  %5583 = vmatpush3.bf16.msra.mxu1 %v6183_v53 }
 0x169   : > { %5584 = vmatprep.subr.bf16.mxu0 %v6918_v12  ;;  %5590 = vmatprep.subr.bf16.mxu1 %v6918_v12 }
 0x16b   : > { %5157 = vmatmul.mubr.msk.f32.vlgmr.msra.gmra.mrb[4].mxu0 %vm684_vm0, %v6116_v36  ;;  %5168 = vmatmul.mubr.msk.f32.vlgmr.msra.gmra.mrb[4].mxu1 %vm684_vm0, %v6116_v36 }
 0x16c   : > { %5586 = vmatpush3.bf16.msra.mxu0 %v6205_v58  ;;  %5592 = vmatpush3.bf16.msra.mxu1 %v6207_v59 }
 0x16d   : > { %5587 = vmatprep.subr.bf16.mxu0 %v6918_v12  ;;  %5593 = vmatprep.subr.bf16.mxu1 %v6918_v12 }
 0x16e   : > { %5178 = vmatprep.mubr.msk.f32.mxu0 %vm5877_vm1, %v6916_v20  ;;  %5189 = vmatprep.mubr.msk.f32.mxu1 %vm5877_vm1, %v6916_v20 }
 0x170   : > { %5589 = vmatpush3.bf16.msra.mxu0 %v6229_v1  ;;  %5595 = vmatpush3.bf16.msra.mxu1 %v6231_v2 }
 0x171   : > { %5596 = vmatprep.subr.bf16.mxu0 %v6918_v12  ;;  %5602 = vmatprep.subr.bf16.mxu1 %v6918_v12 }
 0x173   : > { %5179 = vmatmul.mubr.msk.f32.vlgmr.msra.gmra.mrb[6].mxu0 %vm684_vm0, %v6116_v36  ;;  %5190 = vmatmul.mubr.msk.f32.vlgmr.msra.gmra.mrb[6].mxu1 %vm684_vm0, %v6116_v36 }
 0x174   : > { %5598 = vmatpush3.bf16.msra.mxu0 %v6253_v7  ;;  %5604 = vmatpush3.bf16.msra.mxu1 %v6255_v8 }
 0x175   : > { %5599 = vmatprep.subr.bf16.mxu0 %v6918_v12  ;;  %5605 = vmatprep.subr.bf16.mxu1 %v6918_v12 }
 0x176   : > { %5200 = vmatprep.mubr.msk.f32.mxu0 %vm5877_vm1, %v6916_v20  ;;  %5211 = vmatprep.mubr.msk.f32.mxu1 %vm5877_vm1, %v6916_v20 }
 0x178   : > { %5601 = vmatpush3.bf16.msra.mxu0 %v6277_v16  ;;  %5607 = vmatpush3.bf16.msra.mxu1 %v6279_v18 }
 0x179   : > { %5608 = vmatprep.subr.bf16.mxu0 %v6918_v12  ;;  %5614 = vmatprep.subr.bf16.mxu1 %v6918_v12 }
 0x17b   : > { %5201 = vmatmul.mubr.msk.f32.vlgmr.msra.gmra.mrb[8].mxu0 %vm684_vm0, %v6116_v36  ;;  %5212 = vmatmul.mubr.msk.f32.vlgmr.msra.gmra.mrb[8].mxu1 %vm684_vm0, %v6116_v36 }
 0x17c   : > { %5610 = vmatpush3.bf16.msra.mxu0 %v6301_v26  ;;  %5616 = vmatpush3.bf16.msra.mxu1 %v6303_v27 }
 0x17d   : > { %5611 = vmatprep.subr.bf16.mxu0 %v6918_v12  ;;  %5617 = vmatprep.subr.bf16.mxu1 %v6918_v12 }
 0x17e   : > { %5222 = vmatprep.mubr.msk.f32.mxu0 %vm5877_vm1, %v6916_v20  ;;  %5233 = vmatprep.mubr.msk.f32.mxu1 %vm5877_vm1, %v6916_v20 }
 0x180   : > { %5613 = vmatpush3.bf16.msra.mxu0 %v6325_v35  ;;  %5619 = vmatpush3.bf16.msra.mxu1 %v6327_v37 }
 0x181   : > { %5236 = vmatprep.subr.mxu0 %v6916_v20  ;;  %5251 = vmatprep.subr.mxu1 %v6916_v20 }
 0x183   : > { %5223 = vmatmul.mubr.msk.f32.vlgmr.msra.gmra.mrb[10].mxu0 %vm684_vm0, %v6116_v36  ;;  %5234 = vmatmul.mubr.msk.f32.vlgmr.msra.gmra.mrb[10].mxu1 %vm684_vm0, %v6116_v36  ;;  %v6355_v36 = vld [vmem:[%s6898_s7] ss:$0 sm:$0xff] }
 0x184   : > { %5238 = vmatprep.mubr.msk.f32.mxu0 %vm5877_vm1, %v6916_v20  ;;  %5253 = vmatprep.mubr.msk.f32.mxu1 %vm5877_vm1, %v6916_v20 }
 0x22e   : > { %v806_v38 = vpop.f32.mrb[0].mxu0  ;;  %v876_v39 = vpop.f32.mrb[0].mxu1 }
 0x22f   : > { %v5114_v42 = vpop.f32.mrb[1].mxu0  ;;  %v5125_v43 = vpop.f32.mrb[1].mxu1  ;;  %v807_v51 = vadd.f32 %v6350_v50, %v806_v38  ;;  %v877_v3 = vadd.f32 %v6361_v56, %v876_v39  ;;  %v6414_v39 = vld [vmem:[%s6900_s9] ss:$0 sm:$0xff] }
 0x230   : > { %v6419_v42 = vld [vmem:[%s6900_s9 + $0x1] ss:$0 sm:$0xff] }
 0x231   : > { %v1628_v63 = vmul.f32 0.35355338, %v807_v51  ;;  %v1629_v14 = vmul.f32 0.35355338, %v877_v3 }
 0x236   : > { %v946_v44 = vpop.f32.mrb[2].mxu0  ;;  %v1016_v45 = vpop.f32.mrb[2].mxu1 }
 0x237   : > { %v5136_v48 = vpop.f32.mrb[3].mxu0  ;;  %v5147_v49 = vpop.f32.mrb[3].mxu1  ;;  %v947_v15 = vadd.f32 %v6375_v4, %v946_v44  ;;  %v1017_v21 = vadd.f32 %v6380_v5, %v1016_v45 }
 0x239   : > { %v1630_v32 = vmul.f32 0.35355338, %v947_v15  ;;  %v1631_v38 = vmul.f32 0.35355338, %v1017_v21 }
 0x23e   : > { %v1110_v54 = vpop.f32.mrb[4].mxu0  ;;  %v1180_v55 = vpop.f32.mrb[4].mxu1 }
 0x23f   : > { %v1111_v57 = vadd.f32 %v6355_v36, %v1110_v54  ;;  %v5158_v60 = vpop.f32.mrb[5].mxu0  ;;  %v5169_v61 = vpop.f32.mrb[5].mxu1  ;;  %v1181_v6 = vadd.f32 %v6367_v62, %v1180_v55 }
 0x240   : > { %v586_v61 = vlaneseq }
 0x241   : > { %5237 = vmatpush3.xpose.msk.msra.mxu0 %vm1632_vm2, %v1111_v57 }
 0x242   : > { %5241 = vmatprep.subr.mxu0 %v6916_v20  ;;  %v587_v3 = vshrl.u32 %v586_v61, 7  ;;  %v589_v21 = vand.u32 127, %v586_v61 }
 0x244   : > { %5239 = vmatmul.mubr.msk.f32.vlgmr.msra.gmra.mrb[12].mxu0 %vm1632_vm2, %v1628_v63  ;;  %v591_v63 = vld [vmem:[%s584_s20] sm:$0x1]  ;;  %vm590_vm4 = vcmp.le.s32.totalorder %v589_v21, %v587_v3  ;;  %s4823_s20 = sshll.u32 %s575_s19, 3 }
 0x245   : > { %5242 = vmatpush3.xpose.msk.msra.mxu0 %vm1632_vm2, %v1181_v6  ;;  %5243 = vmatprep.mubr.msk.f32.mxu0 %vm5877_vm1, %v6916_v20  ;;  %vm592_vm3 = vcmp.gt.f32.partialorder %v591_v63, 0.5  ;;  %v596_v6 = vsub.s32 0, %v587_v3  ;;  %s577_s21 = scalar_lea.vmem [#allocation2], %s4823_s20 }
 0x246   : > { %v1250_v22 = vpop.f32.mrb[6].mxu0  ;;  %v1320_v23 = vpop.f32.mrb[6].mxu1  ;;  %5246 = vmatprep.subr.mxu0 %v6916_v20  ;;  %s4751_s29 = sshll.u32 %s577_s21, 4  ;;  %s6850_s29 = int_to_ptr.vmem [resolvable:$true] %s4751_s29 }
 0x247   : > { %v1251_v24 = vadd.f32 %v6387_v9, %v1250_v22  ;;  %v1321_v28 = vadd.f32 %v6392_v11, %v1320_v23  ;;  %v5180_v29 = vpop.f32.mrb[7].mxu0  ;;  %v5191_v30 = vpop.f32.mrb[7].mxu1  ;;  %v5880_v23 = vmov -3.4028235e+38   ;;  %s5812_s0 = scalar_lea.vmem %s6850_s29, 128  ;;  %p5819_p0 = scmp.lt.s32.totalorder %s6850_s29, %s5817_s23 }
 0x248   : > { %5244 = vmatmul.mubr.msk.f32.vlgmr.msra.gmra.mrb[14].mxu0 %vm1632_vm2, %v1629_v14  ;;  %v5879_v14 = vmov 0   ;;  %p5813_p11 = scmp.ne.s32.totalorder %s6850_s29, %s5812_s0  ;;  %p5820_p1 = scmp.lt.s32.totalorder %s5818_s25, %s5812_s0 }
 0x249   : > { %5247 = vmatpush3.xpose.msk.msra.mxu0 %vm1632_vm2, %v1251_v24  ;;  %5252 = vmatpush3.xpose.msk.msra.mxu1 %vm1632_vm2, %v1321_v28  ;;  %v593_v15 = vsel %vm592_vm3, 1, %v5879_v14 }
 0x24a   : > { %5248 = vmatprep.mubr.msk.f32.mxu0 %vm5877_vm1, %v6916_v20  ;;  %5256 = vmatprep.subr.mxu0 %v6916_v20  ;;  %v597_v22 = vrot.slane %v593_v15, %v596_v6  ;;  %p5814_p12 = pnand %p5813_p11, %p6015_p5  ;;  %p5821_p2 = por %p5820_p1, %p5819_p0 }
 0x24b   : > { %5261 = vmatprep.subr.mxu1 %v6916_v20 }
 0x24c   : > { %5249 = vmatmul.mubr.msk.f32.vlgmr.msra.gmra.mrb[16].mxu0 %vm1632_vm2, %v1630_v32  ;;  %5254 = vmatmul.mubr.msk.f32.vlgmr.msra.gmra.mrb[12].mxu1 %vm1632_vm2, %v1631_v38  ;;  %vm598_vm5 = vcmp.eq.s32.totalorder %v597_v22, 1  ;;  %p5815_p13 = pneg %p5814_p12 }
 0x24d   : > { %5258 = vmatprep.mubr.msk.f32.mxu0 %vm5877_vm1, %v6916_v20  ;;  %5263 = vmatprep.mubr.msk.f32.mxu1 %vm5877_vm1, %v6916_v20  ;;  %vm599_vm6 = vmand %vm590_vm4, %vm598_vm5 }
 0x24e   : > { %v1414_v43 = vpop.f32.mrb[8].mxu0  ;;  %v1484_v44 = vpop.f32.mrb[8].mxu1  ;;  %v6437_v24 = vsel %vm599_vm6, 0.0, %v5880_v23  ;;  %p5822_p3 = pnand %p5821_p2, %p5815_p13 }
 0x24f   : > { %v1415_v45 = vadd.f32 %v6414_v39, %v1414_v43  ;;  %v1485_v48 = vadd.f32 %v6419_v42, %v1484_v44  ;;  %v5202_v49 = vpop.f32.mrb[9].mxu0  ;;  %v5213_v51 = vpop.f32.mrb[9].mxu1 }
 0x251   : > { %5257 = vmatpush3.msra.mxu0 %v1415_v45  ;;  %5262 = vmatpush3.msra.mxu1 %v1485_v48 }
 0x252   : > { %5266 = vmatprep.subr.mxu0 %v6916_v20  ;;  %5271 = vmatprep.subr.mxu1 %v6916_v20 }
 0x256   : > { %v6429_v54 = vpop.f32.mrb[10].mxu0  ;;  %v6431_v55 = vpop.f32.mrb[10].mxu1 }
 0x257   : > { %v5224_v57 = vpop.f32.mrb[11].mxu0  ;;  %v5235_v60 = vpop.f32.mrb[11].mxu1 }
 0x317   : > { %v1705_v28 = vpop.f32.mrb[12].mxu0 }
 0x318   : > { %v1706_v29 = vadd.f32 %v1705_v28, %v6437_v24  ;;  %v5240_v30 = vpop.f32.mrb[13].mxu0 }
 0x31a   : > { %v1937_v32 = vsel %vm1632_vm2, %v1706_v29, -inf }
 0x31b   : > { %1938 = vmax.xlane.f32.xlu1 %v1937_v32  ;;  %v1781_v38 = vpop.f32.mrb[14].mxu0 }
 0x31c   : > { %v1782_v43 = vadd.f32 %v1781_v38, %v6437_v24  ;;  %v5245_v44 = vpop.f32.mrb[15].mxu0 }
 0x31e   : > { %v1940_v45 = vsel %vm1632_vm2, %v1782_v43, -inf }
 0x31f   : > { %v1933_v48 = vpop.f32.mrb[12].mxu1  ;;  %1941 = vmax.xlane.f32.xlu1 %v1940_v45  ;;  %v1857_v49 = vpop.f32.mrb[16].mxu0 }
 0x320   : > { %v1934_v51 = vadd.f32 %v1933_v48, %v6437_v24  ;;  %v1858_v57 = vadd.f32 %v1857_v49, %v6437_v24  ;;  %v5250_v60 = vpop.f32.mrb[17].mxu0  ;;  %v5255_v61 = vpop.f32.mrb[13].mxu1 }
 0x322   : > { %v1946_v63 = vsel %vm1632_vm2, %v1934_v51, -inf  ;;  %v1943_v3 = vsel %vm1632_vm2, %v1858_v57, -inf }
 0x323   : > { %1947 = vmax.xlane.f32.xlu1 %v1946_v63  ;;  %1944 = vmax.xlane.f32.xlu0 %v1943_v3 }
 0x3a8   : > { %v1939_v6 = vpop.xlane.xlu1 %1938 }
 0x3a9   : > { %v1949_v14 = vsub.f32 %v1706_v29, %v1939_v6 }
 0x3ab   : > { %v1953_v15 = vmul.f32 1.442695, %v1949_v14 }
 0x3ac   : > { %v1942_v21 = vpop.xlane.xlu1 %1941 }
 0x3ad   : > { %5774 = vpow2.f32 %v1953_v15  ;;  %v1950_v22 = vsub.f32 %v1782_v43, %v1942_v21  ;;  %v6454_v15 = vld [vmem:[%s6900_s9 + $0x2] ss:$0 sm:$0xff] }
 0x3af   : > { %v1955_v23 = vmul.f32 1.442695, %v1950_v22 }
 0x3b0   : > { %v1948_v28 = vpop.xlane.xlu1 %1947  ;;  %v1945_v30 = vpop.xlane.xlu0 %1944 }
 0x3b1   : > { %5776 = vpow2.f32 %v1955_v23  ;;  %v1952_v32 = vsub.f32 %v1934_v51, %v1948_v28  ;;  %v1951_v38 = vsub.f32 %v1858_v57, %v1945_v30  ;;  %v1555_v23 = vadd.f32 %v6454_v15, %v6429_v54  ;;  %v6461_v28 = vld [vmem:[%s6900_s9 + $0x3] ss:$0 sm:$0xff] }
 0x3b3   : > { %v1959_v44 = vmul.f32 1.442695, %v1952_v32  ;;  %v1957_v45 = vmul.f32 1.442695, %v1951_v38  ;;  %v1625_v38 = vadd.f32 %v6461_v28, %v6431_v55  ;;  %v6482_v55 = vld [vmem:[%s6901_s10] sm:$0xff] }
 0x3b5   : > { %5778 = vpow2.f32 %v1959_v44 }
 0x3b6   : > { %5780 = vpow2.f32 %v1957_v45 }
 0x3b7   : > { %v5775_v48 = vpop.eup %5774 }
 0x3b8   : > { %v1961_v49 = vsel %vm1632_vm2, %v5775_v48, 0.0 }
 0x3b9   : > { %1962 = vadd.xlane.f32.xlu0 %v1961_v49  ;;  %v6489_v49 = vld [vmem:[%s6901_s10 + $0x8] sm:$0xff] }
 0x3bb   : > { %v5777_v60 = vpop.eup %5776 }
 0x3bc   : > { %v1964_v29 = vsel %vm1632_vm2, %v5777_v60, 0.0 }
 0x3bd   : > { %1965 = vadd.xlane.f32.xlu1 %v1964_v29 }
 0x3bf   : > { %v5779_v61 = vpop.eup %5778 }
 0x3c0   : > { %v5781_v43 = vpop.eup %5780  ;;  %v1970_v63 = vsel %vm1632_vm2, %v5779_v61, 0.0 }
 0x3c1   : > { %1971 = vadd.xlane.f32.xlu1 %v1970_v63  ;;  %v1967_v51 = vsel %vm1632_vm2, %v5781_v43, 0.0 }
 0x3c2   : > { %1968 = vadd.xlane.f32.xlu0 %v1967_v51 }
 0x446   : > { %v1963_v57 = vpop.xlane.xlu0 %1962 }
 0x447   : > { %5782 = vrcp.f32 %v1963_v57 }
 0x44a   : > { %v1966_v3 = vpop.xlane.xlu1 %1965 }
 0x44b   : > { %5784 = vrcp.f32 %v1966_v3 }
 0x44e   : > { %v1972_v6 = vpop.xlane.xlu1 %1971 }
 0x44f   : > { %5786 = vrcp.f32 %v1972_v6  ;;  %v1969_v14 = vpop.xlane.xlu0 %1968 }
 0x450   : > { %5788 = vrcp.f32 %v1969_v14 }
 0x451   : > { %v5783_v21 = vpop.eup %5782 }
 0x452   : > { %v1977_v22 = vmul.f32 %v5783_v21, %v5775_v48 }
 0x454   : > { %5259 = vmatmul.mubr.msk.f32.vlgmr.msra.gmra.mrb[18].mxu0 %vm1632_vm2, %v1977_v22 }
 0x455   : > { %v5785_v30 = vpop.eup %5784  ;;  %5267 = vmatpush3.msra.mxu0 %v1555_v23  ;;  %5268 = vmatprep.mubr.msk.f32.mxu0 %vm5877_vm1, %v6916_v20 }
 0x456   : > { %v1978_v32 = vmul.f32 %v5785_v30, %v5777_v60  ;;  %5276 = vmatprep.subr.mxu0 %v6916_v20  ;;  %v6496_v60 = vld [vmem:[%s6901_s10 + $0x10] sm:$0xff] }
 0x458   : > { %5264 = vmatmul.mubr.msk.f32.vlgmr.msra.gmra.mrb[14].mxu1 %vm1632_vm2, %v1978_v32 }
 0x459   : > { %v5787_v54 = vpop.eup %5786  ;;  %5272 = vmatpush3.msra.mxu1 %v1625_v38  ;;  %5273 = vmatprep.mubr.msk.f32.mxu1 %vm5877_vm1, %v6916_v20 }
 0x45a   : > { %v5789_v44 = vpop.eup %5788  ;;  %v1980_v45 = vmul.f32 %v5787_v54, %v5779_v61  ;;  %5281 = vmatprep.subr.mxu1 %v6916_v20 }
 0x45b   : > { %v1979_v48 = vmul.f32 %v5789_v44, %v5781_v43  ;;  %v6505_v43 = vld [vmem:[%s6901_s10 + $0x18] sm:$0xff] }
 0x45c   : > { %5274 = vmatmul.mubr.msk.f32.vlgmr.msra.gmra.mrb[16].mxu1 %vm1632_vm2, %v1980_v45 }
 0x45d   : > { %5269 = vmatmul.mubr.msk.f32.vlgmr.msra.gmra.mrb[20].mxu0 %vm1632_vm2, %v1979_v48  ;;  %5283 = vmatprep.mubr.msk.f32.mxu1 %vm5877_vm1, %v6916_v20 }
 0x45e   : > { %5278 = vmatprep.mubr.msk.f32.mxu0 %vm5877_vm1, %v6916_v20  ;;  %5277 = vmatpush3.msra.mxu0 %v6482_v55 }
 0x45f   : > { %5286 = vmatprep.subr.mxu0 %v6916_v20  ;;  %5282 = vmatpush3.msra.mxu1 %v6489_v49 }
 0x460   : > { %5291 = vmatprep.subr.mxu1 %v6916_v20 }
 0x527   : > { %v2050_v29 = vpop.f32.mrb[18].mxu0 }
 0x528   : > { %v5260_v61 = vpop.f32.mrb[19].mxu0  ;;  %5279 = vmatmul.mubr.msk.f32.vlgmr.msra.gmra.mrb[22].mxu0 %vm1632_vm2, %v2050_v29 }
 0x529   : > { %5287 = vmatpush3.msra.mxu0 %v6496_v60  ;;  %5288 = vmatprep.mubr.msk.f32.mxu0 %vm5877_vm1, %v6916_v20 }
 0x52a   : > { %5620 = vmatprep.subr.bf16.mxu0 %v6918_v12 }
 0x52b   : > { %v2123_v63 = vpop.f32.mrb[14].mxu1 }
 0x52c   : > { %v5265_v51 = vpop.f32.mrb[15].mxu1  ;;  %5284 = vmatmul.mubr.msk.f32.vlgmr.msra.gmra.mrb[18].mxu1 %vm1632_vm2, %v2123_v63 }
 0x52d   : > { %5292 = vmatpush3.msra.mxu1 %v6505_v43  ;;  %5293 = vmatprep.mubr.msk.f32.mxu1 %vm5877_vm1, %v6916_v20  ;;  %v6525_v51 = vld [vmem:[%s6902_s11] ss:$0 sm:$0xff] }
 0x52e   : > { %5626 = vmatprep.subr.bf16.mxu1 %v6918_v12 }
 0x52f   : > { %v2269_v57 = vpop.f32.mrb[16].mxu1 }
 0x530   : > { %v2196_v3 = vpop.f32.mrb[20].mxu0  ;;  %v5275_v6 = vpop.f32.mrb[17].mxu1  ;;  %5294 = vmatmul.mubr.msk.f32.vlgmr.msra.gmra.mrb[20].mxu1 %vm1632_vm2, %v2269_v57 }
 0x531   : > { %v5270_v14 = vpop.f32.mrb[21].mxu0  ;;  %5289 = vmatmul.mubr.msk.f32.vlgmr.msra.gmra.mrb[24].mxu0 %vm1632_vm2, %v2196_v3  ;;  %5323 = vmatprep.mubr.msk.f32.mxu1 %vm5877_vm1, %v6916_v20 }
 0x532   : > { %5304 = vmatprep.mubr.msk.f32.mxu0 %vm5877_vm1, %v6916_v20 }
 0x5fb   : > { %v2342_v21 = vpop.f32.mrb[22].mxu0 }
 0x5fc   : > { %v5280_v22 = vpop.f32.mrb[23].mxu0  ;;  %v2565_v30 = vsel %vm684_vm0, %v2342_v21, 0.0 }
 0x5ff   : > { %v2415_v23 = vpop.f32.mrb[18].mxu1 }
 0x600   : > { %v2566_v32 = vsel %vm684_vm0, %v2415_v23, 0.0  ;;  %v5285_v38 = vpop.f32.mrb[19].mxu1 }
 0x601   : > { %v2567_v54 = vadd.f32 %v2566_v32, %v2565_v30 }
 0x603   : > { %v2561_v44 = vpop.f32.mrb[20].mxu1 }
 0x604   : > { %v2488_v45 = vpop.f32.mrb[24].mxu0  ;;  %v5295_v48 = vpop.f32.mrb[21].mxu1  ;;  %v2570_v57 = vsel %vm684_vm0, %v2561_v44, 0.0 }
 0x605   : > { %v2568_v29 = vsel %vm684_vm0, %v2488_v45, 0.0  ;;  %v5290_v61 = vpop.f32.mrb[25].mxu0  ;;  %v672_v45 = vld [vmem:[%s6905_s14 + $0x10] sm:$0xff]  ;;  %v673_v48 = vld [vmem:[%s6905_s14 + $0x18] sm:$0xff] }
 0x606   : > { %v2569_v63 = vadd.f32 %v2568_v29, %v2567_v54  ;;  %v670_v54 = vld [vmem:[%s6905_s14] sm:$0xff]  ;;  %v6552_v29 = vpack.c.bf16 %v673_v48, %v672_v45 }
 0x607   : > { %v675_v61 = vld [vmem:[%s6907_s16] sm:$0xff] }
 0x608   : > { %v2571_v3 = vadd.f32 %v2570_v57, %v2569_v63  ;;  %v676_v63 = vld [vmem:[%s6907_s16 + $0x8] sm:$0xff]  ;;  %v677_v57 = vld [vmem:[%s6907_s16 + $0x10] sm:$0xff]  ;;  %v6589_v48 = vld [vmem:[%s6903_s12] ss:$0 sm:$0xff] }
 0x60a   : > { %v2578_v6 = vadd.f32 %v6525_v51, %v2571_v3  ;;  %v6565_v3 = vpack.c.bf16 %v676_v63, %v675_v61  ;;  %v6594_v63 = vld [vmem:[%s6904_s13] ss:$0 sm:$0xff] }
 0x60c   : > { %v6530_v14 = vadd.f32 %v2578_v6, %v6033_v0  ;;  %v671_v0 = vld [vmem:[%s6905_s14 + $0x8] sm:$0xff]  ;;  %v678_v6 = vld [vmem:[%s6907_s16 + $0x18] sm:$0xff]  ;;  %5628 = vmatpush3.bf16.msra.mxu1 %v6565_v3 }
 0x60d   : > { %v6542_v44 = vpack.c.bf16 %v671_v0, %v670_v54  ;;  %5629 = vmatprep.subr.bf16.mxu1 %v6918_v12 }
 0x60e   : > { %v2580_v21 = vsel %vm684_vm0, %v6530_v14, 0.0 }
 0x60f   : > { %2581 = vadd.xlane.f32.xlu0 %v2580_v21  ;;  %5622 = vmatpush3.bf16.msra.mxu0 %v6542_v44  ;;  %v6571_v21 = vpack.c.bf16 %v678_v6, %v677_v57 }
 0x610   : > { %5623 = vmatprep.subr.bf16.mxu0 %v6918_v12 }
 0x611   : > { %5631 = vmatpush3.bf16.msra.mxu1 %v6571_v21 }
 0x612   : > { %5632 = vmatprep.subr.bf16.mxu1 %v6918_v12 }
 0x613   : > { %5625 = vmatpush3.bf16.msra.mxu0 %v6552_v29 }
 0x614   : > { %5638 = vmatprep.subr.bf16.mxu0 %v6918_v12 }
 0x69c   : > { %v2582_v22 = vpop.xlane.xlu0 %2581 }
 0x69d   : > { %v2583_v23 = vmul.f32 0.03125, %v2582_v22  ;;  %v679_v22 = vld [vmem:[%s6907_s16 + $0x20] sm:$0xff] }
 0x69f   : > { %v2584_v30 = vsub.f32 %v6530_v14, %v2583_v23  ;;  %v680_v23 = vld [vmem:[%s6907_s16 + $0x28] sm:$0xff] }
 0x6a1   : > { %v2585_v32 = vmul.f32 %v2584_v30, %v2584_v30 }
 0x6a3   : > { %v2586_v38 = vsel %vm684_vm0, %v2585_v32, 0.0  ;;  %v6581_v32 = vpack.c.bf16 %v680_v23, %v679_v22  ;;  %v682_v22 = vld [vmem:[%s6907_s16 + $0x38] sm:$0xff] }
 0x6a4   : > { %2587 = vadd.xlane.f32.xlu1 %v2586_v38 }
 0x6a5   : > { %5634 = vmatpush3.bf16.msra.mxu1 %v6581_v32 }
 0x6a6   : > { %5635 = vmatprep.subr.bf16.mxu1 %v6918_v12 }
 0x731   : > { %v2588_v38 = vpop.xlane.xlu1 %2587 }
 0x732   : > { %v2589_v54 = vmul.f32 0.03125, %v2588_v38 }
 0x734   : > { %v2590_v0 = vadd.f32 1e-05, %v2589_v54 }
 0x736   : > { %5790 = vrsqrt.f32 %v2590_v0 }
 0x740   : > { %v5791_v45 = vpop.eup %5790 }
 0x741   : > { %v2592_v61 = vmul.f32 %v5791_v45, %v2584_v30  ;;  %v681_v30 = vld [vmem:[%s6907_s16 + $0x30] sm:$0xff]  ;;  %v6631_v45 = vld [vmem:[%s6908_s17] ss:$0 sm:$0xff] }
 0x742   : > { %v6611_v23 = vpack.c.bf16 %v682_v22, %v681_v30 }
 0x743   : > { %v2599_v57 = vmul.f32 %v6589_v48, %v2592_v61 }
 0x744   : > { %5637 = vmatpush3.bf16.msra.mxu1 %v6611_v23 }
 0x745   : > { %v2606_v6 = vadd.f32 %v6594_v63, %v2599_v57  ;;  %5650 = vmatprep.subr.bf16.mxu1 %v6918_v12 }
 0x747   : > { %5305 = vmatmul.mubr.msk.f32.vlgmr.msra.gmra.mrb[26].mxu0 %vm684_vm0, %v2606_v6 }
 0x748   : > { %5640 = vmatpush3.bf16.msra.mxu0 %v6048_v10  ;;  %5334 = vmatprep.mubr.msk.f32.mxu0 %vm5877_vm1, %v6916_v20  ;;  %v6618_v10 = vld [vmem:[%s6906_s15] ss:$0 sm:$0xff] }
 0x749   : > { %5641 = vmatprep.subr.bf16.mxu0 %v6918_v12 }
 0x74c   : > { %5643 = vmatpush3.bf16.msra.mxu0 %v6070_v17 }
 0x74d   : > { %5644 = vmatprep.subr.bf16.mxu0 %v6918_v12 }
 0x81a   : > { %v2682_v17 = vpop.f32.mrb[26].mxu0 }
 0x81b   : > { %v2683_v38 = vadd.f32 %v6618_v10, %v2682_v17  ;;  %v5306_v54 = vpop.f32.mrb[27].mxu0 }
 0x81d   : > { %v2686_v0 = vmax.f32 %v2683_v38, 0.0 }
 0x81f   : > { %5324 = vmatmul.mubr.msk.f32.vlgmr.msra.gmra.mrb[22].mxu1 %vm2687_vm7, %v2686_v0 }
 0x820   : > { %5652 = vmatpush3.bf16.msra.mxu1 %v6108_v33  ;;  %5356 = vmatprep.mubr.msk.f32.mxu1 %vm5877_vm1, %v6916_v20 }
 0x821   : > { %5653 = vmatprep.subr.bf16.mxu1 %v6918_v12 }
 0x824   : > { %5655 = vmatpush3.bf16.msra.mxu1 %v6133_v40 }
 0x825   : > { %5662 = vmatprep.subr.bf16.mxu1 %v6918_v12 }
 0x8f2   : > { %v2757_v61 = vpop.f32.mrb[22].mxu1 }
 0x8f3   : > { %v2761_v57 = vadd.f32 %v2757_v61, %v6530_v14  ;;  %v5325_v6 = vpop.f32.mrb[23].mxu1 }
 0x8f5   : > { %v6635_v33 = vadd.f32 %v6631_v45, %v2761_v57 }
 0x8f7   : > { %v2769_v30 = vsel %vm684_vm0, %v6635_v33, 0.0 }
 0x8f8   : > { %2770 = vadd.xlane.f32.xlu0 %v2769_v30  ;;  %v6934_v30 = vmov 0.0|0.0  }
 0x985   : > { %v2771_v22 = vpop.xlane.xlu0 %2770 }
 0x986   : > { %v2772_v40 = vmul.f32 0.03125, %v2771_v22 }
 0x988   : > { %v2773_v17 = vsub.f32 %v6635_v33, %v2772_v40 }
 0x98a   : > { %v2774_v38 = vmul.f32 %v2773_v17, %v2773_v17 }
 0x98c   : > { %v2775_v54 = vsel %vm684_vm0, %v2774_v38, 0.0 }
 0x98d   : > { %2776 = vadd.xlane.f32.xlu1 %v2775_v54 }
 0xa1a   : > { %v2777_v0 = vpop.xlane.xlu1 %2776 }
 0xa1b   : > { %v2778_v20 = vmul.f32 0.03125, %v2777_v0 }
 0xa1d   : > { %v2779_v12 = vadd.f32 1e-05, %v2778_v20 }
 0xa1f   : > { %5792 = vrsqrt.f32 %v2779_v12  ;;  %v6935_v12 = vmov 0.0  }
 0xa29   : > { %v5793_v14 = vpop.eup %5792 }
 0xa2a   : > { %v2781_v61 = vmul.f32 %v5793_v14, %v2773_v17 }
 0xa2c   : > { %v2782_v57 = vmul.f32 %v6088_v25, %v2781_v61 }
 0xa2e   : > { %v6643_v6 = vadd.f32 %v6105_v31, %v2782_v57 }
 0xa30   : > { %5335 = vmatmul.mubr.msk.f32.vlgmr.msra.gmra.mrb[28].mxu0 %vm684_vm0, %v6643_v6  ;;  %5357 = vmatmul.mubr.msk.f32.vlgmr.msra.gmra.mrb[24].mxu1 %vm684_vm0, %v6643_v6 }
 0xa31   : > { %5646 = vmatpush3.bf16.msra.mxu0 %v6055_v13  ;;  %5664 = vmatpush3.bf16.msra.mxu1 %v6157_v46 }
 0xa32   : > { %5647 = vmatprep.subr.bf16.mxu0 %v6934_v30  ;;  %5665 = vmatprep.subr.bf16.mxu1 %v6934_v30 }
 0xa33   : > { %5345 = vmatprep.mubr.msk.f32.mxu0 %vm5877_vm1, %v6935_v12  ;;  %5378 = vmatprep.mubr.msk.f32.mxu1 %vm5877_vm1, %v6935_v12 }
 0xa35   : > { %5649 = vmatpush3.bf16.msra.mxu0 %v6075_v19  ;;  %5667 = vmatpush3.bf16.msra.mxu1 %v6181_v52 }
 0xa36   : > { %5656 = vmatprep.subr.bf16.mxu0 %v6934_v30  ;;  %5674 = vmatprep.subr.bf16.mxu1 %v6934_v30 }
 0xa38   : > { %5346 = vmatmul.mubr.msk.f32.vlgmr.msra.gmra.mrb[30].mxu0 %vm684_vm0, %v6643_v6  ;;  %5379 = vmatmul.mubr.msk.f32.vlgmr.msra.gmra.mrb[26].mxu1 %vm684_vm0, %v6643_v6 }
 0xa39   : > { %5658 = vmatpush3.bf16.msra.mxu0 %v6110_v34  ;;  %5676 = vmatpush3.bf16.msra.mxu1 %v6205_v58 }
 0xa3a   : > { %5659 = vmatprep.subr.bf16.mxu0 %v6934_v30  ;;  %5677 = vmatprep.subr.bf16.mxu1 %v6934_v30 }
 0xa3b   : > { %5367 = vmatprep.mubr.msk.f32.mxu0 %vm5877_vm1, %v6935_v12  ;;  %5400 = vmatprep.mubr.msk.f32.mxu1 %vm5877_vm1, %v6935_v12 }
 0xa3d   : > { %5661 = vmatpush3.bf16.msra.mxu0 %v6135_v41  ;;  %5679 = vmatpush3.bf16.msra.mxu1 %v6229_v1 }
 0xa3e   : > { %5668 = vmatprep.subr.bf16.mxu0 %v6934_v30  ;;  %5686 = vmatprep.subr.bf16.mxu1 %v6934_v30 }
 0xa40   : > { %5368 = vmatmul.mubr.msk.f32.vlgmr.msra.gmra.mrb[32].mxu0 %vm684_vm0, %v6643_v6  ;;  %5401 = vmatmul.mubr.msk.f32.vlgmr.msra.gmra.mrb[28].mxu1 %vm684_vm0, %v6643_v6 }
 0xa41   : > { %5670 = vmatpush3.bf16.msra.mxu0 %v6159_v47  ;;  %5688 = vmatpush3.bf16.msra.mxu1 %v6253_v7 }
 0xa42   : > { %5671 = vmatprep.subr.bf16.mxu0 %v6934_v30  ;;  %5689 = vmatprep.subr.bf16.mxu1 %v6934_v30 }
 0xa43   : > { %5389 = vmatprep.mubr.msk.f32.mxu0 %vm5877_vm1, %v6935_v12  ;;  %5422 = vmatprep.mubr.msk.f32.mxu1 %vm5877_vm1, %v6935_v12 }
 0xa45   : > { %5673 = vmatpush3.bf16.msra.mxu0 %v6183_v53  ;;  %5691 = vmatpush3.bf16.msra.mxu1 %v6277_v16 }
 0xa46   : > { %5680 = vmatprep.subr.bf16.mxu0 %v6934_v30  ;;  %5698 = vmatprep.subr.bf16.mxu1 %v6934_v30 }
 0xa48   : > { %5390 = vmatmul.mubr.msk.f32.vlgmr.msra.gmra.mrb[34].mxu0 %vm684_vm0, %v6643_v6  ;;  %5423 = vmatmul.mubr.msk.f32.vlgmr.msra.gmra.mrb[30].mxu1 %vm684_vm0, %v6643_v6 }
 0xa49   : > { %5682 = vmatpush3.bf16.msra.mxu0 %v6207_v59  ;;  %5700 = vmatpush3.bf16.msra.mxu1 %v6301_v26 }
 0xa4a   : > { %5683 = vmatprep.subr.bf16.mxu0 %v6934_v30  ;;  %5701 = vmatprep.subr.bf16.mxu1 %v6934_v30 }
 0xa4b   : > { %5411 = vmatprep.mubr.msk.f32.mxu0 %vm5877_vm1, %v6935_v12  ;;  %5444 = vmatprep.mubr.msk.f32.mxu1 %vm5877_vm1, %v6935_v12 }
 0xa4d   : > { %5685 = vmatpush3.bf16.msra.mxu0 %v6231_v2  ;;  %5703 = vmatpush3.bf16.msra.mxu1 %v6325_v35 }
 0xa4e   : > { %5692 = vmatprep.subr.bf16.mxu0 %v6934_v30  ;;  %5458 = vmatprep.subr.mxu1 %v6935_v12 }
 0xa50   : > { %5412 = vmatmul.mubr.msk.f32.vlgmr.msra.gmra.mrb[36].mxu0 %vm684_vm0, %v6643_v6  ;;  %5445 = vmatmul.mubr.msk.f32.vlgmr.msra.gmra.mrb[32].mxu1 %vm684_vm0, %v6643_v6 }
 0xa51   : > { %5694 = vmatpush3.bf16.msra.mxu0 %v6255_v8  ;;  %5433 = vmatprep.mubr.msk.f32.mxu0 %vm5877_vm1, %v6935_v12 }
 0xa52   : > { %5695 = vmatprep.subr.bf16.mxu0 %v6934_v30  ;;  %5460 = vmatprep.mubr.msk.f32.mxu1 %vm5877_vm1, %v6935_v12 }
 0xa55   : > { %5697 = vmatpush3.bf16.msra.mxu0 %v6279_v18 }
 0xa56   : > { %5704 = vmatprep.subr.bf16.mxu0 %v6934_v30 }
 0xa58   : > { %5434 = vmatmul.mubr.msk.f32.vlgmr.msra.gmra.mrb[38].mxu0 %vm684_vm0, %v6643_v6 }
 0xa59   : > { %5706 = vmatpush3.bf16.msra.mxu0 %v6303_v27  ;;  %5455 = vmatprep.mubr.msk.f32.mxu0 %vm5877_vm1, %v6935_v12 }
 0xa5a   : > { %5707 = vmatprep.subr.bf16.mxu0 %v6934_v30 }
 0xa5d   : > { %5709 = vmatpush3.bf16.msra.mxu0 %v6327_v37 }
 0xa5e   : > { %5468 = vmatprep.subr.mxu0 %v6935_v12 }
 0xa60   : > { %5456 = vmatmul.mubr.msk.f32.vlgmr.msra.gmra.mrb[40].mxu0 %vm684_vm0, %v6643_v6 }
 0xa61   : > { %5470 = vmatprep.mubr.msk.f32.mxu0 %vm5877_vm1, %v6935_v12 }
 0xb03   : > { %v2853_v13 = vpop.f32.mrb[28].mxu0  ;;  %v2993_v19 = vpop.f32.mrb[24].mxu1 }
 0xb04   : > { %v5336_v20 = vpop.f32.mrb[29].mxu0  ;;  %v5358_v25 = vpop.f32.mrb[25].mxu1  ;;  %v2854_v31 = vadd.f32 %v6350_v50, %v2853_v13  ;;  %v2994_v58 = vadd.f32 %v6375_v4, %v2993_v19 }
 0xb06   : > { %v3627_v53 = vmul.f32 0.35355338, %v2854_v31  ;;  %v3629_v16 = vmul.f32 0.35355338, %v2994_v58 }
 0xb0b   : > { %v2923_v34 = vpop.f32.mrb[30].mxu0  ;;  %v3133_v41 = vpop.f32.mrb[26].mxu1 }
 0xb0c   : > { %v3134_v46 = vadd.f32 %v6355_v36, %v3133_v41  ;;  %v5347_v47 = vpop.f32.mrb[31].mxu0  ;;  %v5380_v52 = vpop.f32.mrb[27].mxu1  ;;  %v2924_v18 = vadd.f32 %v6361_v56, %v2923_v34 }
 0xb0e   : > { %5459 = vmatpush3.xpose.msk.msra.mxu1 %vm1632_vm2, %v3134_v46  ;;  %v3628_v4 = vmul.f32 0.35355338, %v2924_v18 }
 0xb0f   : > { %5463 = vmatprep.subr.mxu1 %v6935_v12 }
 0xb11   : > { %5461 = vmatmul.mubr.msk.f32.vlgmr.msra.gmra.mrb[34].mxu1 %vm1632_vm2, %v3627_v53 }
 0xb12   : > { %5465 = vmatprep.mubr.msk.f32.mxu1 %vm5877_vm1, %v6935_v12 }
 0xb13   : > { %v3063_v59 = vpop.f32.mrb[32].mxu0  ;;  %v3273_v1 = vpop.f32.mrb[28].mxu1 }
 0xb14   : > { %v3274_v2 = vadd.f32 %v6387_v9, %v3273_v1  ;;  %v5369_v7 = vpop.f32.mrb[33].mxu0  ;;  %v5402_v8 = vpop.f32.mrb[29].mxu1  ;;  %v3064_v56 = vadd.f32 %v6380_v5, %v3063_v59 }
 0xb16   : > { %5469 = vmatpush3.xpose.msk.msra.mxu0 %vm1632_vm2, %v3274_v2  ;;  %v3630_v17 = vmul.f32 0.35355338, %v3064_v56 }
 0xb17   : > { %5478 = vmatprep.subr.mxu0 %v6935_v12 }
 0xb19   : > { %5471 = vmatmul.mubr.msk.f32.vlgmr.msra.gmra.mrb[42].mxu0 %vm1632_vm2, %v3629_v16 }
 0xb1a   : > { %5480 = vmatprep.mubr.msk.f32.mxu0 %vm5877_vm1, %v6935_v12 }
 0xb1b   : > { %v3203_v26 = vpop.f32.mrb[34].mxu0  ;;  %v3413_v27 = vpop.f32.mrb[30].mxu1 }
 0xb1c   : > { %v3204_v35 = vadd.f32 %v6367_v62, %v3203_v26  ;;  %v3414_v37 = vadd.f32 %v6414_v39, %v3413_v27  ;;  %v5391_v50 = vpop.f32.mrb[35].mxu0  ;;  %v5424_v36 = vpop.f32.mrb[31].mxu1 }
 0xb1e   : > { %5464 = vmatpush3.xpose.msk.msra.mxu1 %vm1632_vm2, %v3204_v35  ;;  %5479 = vmatpush3.msra.mxu0 %v3414_v37 }
 0xb1f   : > { %5473 = vmatprep.subr.mxu1 %v6935_v12  ;;  %5488 = vmatprep.subr.mxu0 %v6935_v12 }
 0xb21   : > { %5466 = vmatmul.mubr.msk.f32.vlgmr.msra.gmra.mrb[36].mxu1 %vm1632_vm2, %v3628_v4 }
 0xb22   : > { %5475 = vmatprep.mubr.msk.f32.mxu1 %vm5877_vm1, %v6935_v12 }
 0xb23   : > { %v3343_v62 = vpop.f32.mrb[36].mxu0  ;;  %v6757_v9 = vpop.f32.mrb[32].mxu1 }
 0xb24   : > { %v3344_v39 = vadd.f32 %v6392_v11, %v3343_v62  ;;  %v5413_v22 = vpop.f32.mrb[37].mxu0  ;;  %v5446_v40 = vpop.f32.mrb[33].mxu1 }
 0xb26   : > { %5474 = vmatpush3.xpose.msk.msra.mxu1 %vm1632_vm2, %v3344_v39 }
 0xb27   : > { %5483 = vmatprep.subr.mxu1 %v6935_v12 }
 0xb29   : > { %5476 = vmatmul.mubr.msk.f32.vlgmr.msra.gmra.mrb[38].mxu1 %vm1632_vm2, %v3630_v17 }
 0xb2a   : > { %5485 = vmatprep.mubr.msk.f32.mxu1 %vm5877_vm1, %v6935_v12 }
 0xb2b   : > { %v3483_v38 = vpop.f32.mrb[38].mxu0 }
 0xb2c   : > { %v3484_v5 = vadd.f32 %v6419_v42, %v3483_v38  ;;  %v5435_v54 = vpop.f32.mrb[39].mxu0 }
 0xb2d   : > { %v3554_v54 = vadd.f32 %v6454_v15, %v6757_v9 }
 0xb2e   : > { %5484 = vmatpush3.msra.mxu1 %v3484_v5 }
 0xb2f   : > { %5493 = vmatprep.subr.mxu1 %v6935_v12 }
 0xb33   : > { %v6767_v11 = vpop.f32.mrb[40].mxu0 }
 0xb34   : > { %v5457_v0 = vpop.f32.mrb[41].mxu0 }
 0xbe4   : > { %v3703_v14 = vpop.f32.mrb[34].mxu1 }
 0xbe5   : > { %v3704_v61 = vadd.f32 %v3703_v14, %v6437_v24  ;;  %v5462_v57 = vpop.f32.mrb[35].mxu1 }
 0xbe7   : > { %v3935_v6 = vsel %vm1632_vm2, %v3704_v61, -inf }
 0xbe8   : > { %3936 = vmax.xlane.f32.xlu0 %v3935_v6  ;;  %v3624_v6 = vadd.f32 %v6461_v28, %v6767_v11 }
 0xbec   : > { %v3855_v13 = vpop.f32.mrb[42].mxu0 }
 0xbed   : > { %v3856_v19 = vadd.f32 %v3855_v13, %v6437_v24  ;;  %v5472_v20 = vpop.f32.mrb[43].mxu0 }
 0xbef   : > { %v3941_v42 = vsel %vm1632_vm2, %v3856_v19, -inf }
 0xbf0   : > { %3942 = vmax.xlane.f32.xlu0 %v3941_v42 }
 0xbf4   : > { %v3779_v25 = vpop.f32.mrb[36].mxu1 }
 0xbf5   : > { %v3780_v31 = vadd.f32 %v3779_v25, %v6437_v24  ;;  %v5467_v34 = vpop.f32.mrb[37].mxu1 }
 0xbf7   : > { %v3938_v41 = vsel %vm1632_vm2, %v3780_v31, -inf }
 0xbf8   : > { %3939 = vmax.xlane.f32.xlu1 %v3938_v41 }
 0xbfc   : > { %v3931_v46 = vpop.f32.mrb[38].mxu1 }
 0xbfd   : > { %v3932_v47 = vadd.f32 %v3931_v46, %v6437_v24  ;;  %v5477_v52 = vpop.f32.mrb[39].mxu1 }
 0xbff   : > { %v3944_v53 = vsel %vm1632_vm2, %v3932_v47, -inf }
 0xc00   : > { %3945 = vmax.xlane.f32.xlu1 %v3944_v53 }
 0xc75   : > { %v3937_v58 = vpop.xlane.xlu0 %3936 }
 0xc76   : > { %v3947_v59 = vsub.f32 %v3704_v61, %v3937_v58 }
 0xc78   : > { %v3951_v1 = vmul.f32 1.442695, %v3947_v59 }
 0xc7a   : > { %5794 = vpow2.f32 %v3951_v1 }
 0xc7d   : > { %v3943_v2 = vpop.xlane.xlu0 %3942 }
 0xc7e   : > { %v3949_v7 = vsub.f32 %v3856_v19, %v3943_v2 }
 0xc80   : > { %v3955_v8 = vmul.f32 1.442695, %v3949_v7 }
 0xc82   : > { %5796 = vpow2.f32 %v3955_v8 }
 0xc84   : > { %v5795_v16 = vpop.eup %5794 }
 0xc85   : > { %v3940_v18 = vpop.xlane.xlu1 %3939  ;;  %v3959_v26 = vsel %vm1632_vm2, %v5795_v16, 0.0 }
 0xc86   : > { %v3948_v27 = vsub.f32 %v3780_v31, %v3940_v18  ;;  %3960 = vadd.xlane.f32.xlu0 %v3959_v26 }
 0xc88   : > { %v3953_v35 = vmul.f32 1.442695, %v3948_v27 }
 0xc8a   : > { %5798 = vpow2.f32 %v3953_v35 }
 0xc8c   : > { %v5797_v24 = vpop.eup %5796 }
 0xc8d   : > { %v3946_v37 = vpop.xlane.xlu1 %3945  ;;  %v3965_v50 = vsel %vm1632_vm2, %v5797_v24, 0.0 }
 0xc8e   : > { %v3950_v36 = vsub.f32 %v3932_v47, %v3946_v37  ;;  %3966 = vadd.xlane.f32.xlu0 %v3965_v50 }
 0xc90   : > { %v3957_v4 = vmul.f32 1.442695, %v3950_v36 }
 0xc92   : > { %5800 = vpow2.f32 %v3957_v4 }
 0xc94   : > { %v5799_v56 = vpop.eup %5798 }
 0xc95   : > { %v3962_v62 = vsel %vm1632_vm2, %v5799_v56, 0.0 }
 0xc96   : > { %3963 = vadd.xlane.f32.xlu1 %v3962_v62 }
 0xc9c   : > { %v5801_v39 = vpop.eup %5800 }
 0xc9d   : > { %v3968_v22 = vsel %vm1632_vm2, %v5801_v39, 0.0 }
 0xc9e   : > { %3969 = vadd.xlane.f32.xlu1 %v3968_v22 }
 0xd13   : > { %v3961_v40 = vpop.xlane.xlu0 %3960 }
 0xd14   : > { %5802 = vrcp.f32 %v3961_v40 }
 0xd1b   : > { %v3967_v17 = vpop.xlane.xlu0 %3966 }
 0xd1c   : > { %5804 = vrcp.f32 %v3967_v17 }
 0xd1e   : > { %v5803_v38 = vpop.eup %5802 }
 0xd1f   : > { %v3975_v5 = vmul.f32 %v5803_v38, %v5795_v16 }
 0xd21   : > { %5481 = vmatmul.mubr.msk.f32.vlgmr.msra.gmra.mrb[44].mxu0 %vm1632_vm2, %v3975_v5 }
 0xd22   : > { %5489 = vmatpush3.msra.mxu0 %v3554_v54  ;;  %5490 = vmatprep.mubr.msk.f32.mxu0 %vm5877_vm1, %v6935_v12 }
 0xd23   : > { %v3964_v0 = vpop.xlane.xlu1 %3963  ;;  %5498 = vmatprep.subr.mxu0 %v6935_v12 }
 0xd24   : > { %5806 = vrcp.f32 %v3964_v0 }
 0xd26   : > { %v5805_v14 = vpop.eup %5804 }
 0xd27   : > { %v3977_v61 = vmul.f32 %v5805_v14, %v5797_v24 }
 0xd29   : > { %5491 = vmatmul.mubr.msk.f32.vlgmr.msra.gmra.mrb[46].mxu0 %vm1632_vm2, %v3977_v61 }
 0xd2a   : > { %5499 = vmatpush3.msra.mxu0 %v6482_v55  ;;  %5500 = vmatprep.mubr.msk.f32.mxu0 %vm5877_vm1, %v6935_v12 }
 0xd2b   : > { %v3970_v15 = vpop.xlane.xlu1 %3969  ;;  %5508 = vmatprep.subr.mxu0 %v6935_v12 }
 0xd2c   : > { %5808 = vrcp.f32 %v3970_v15 }
 0xd2e   : > { %v5807_v9 = vpop.eup %5806 }
 0xd2f   : > { %v3976_v57 = vmul.f32 %v5807_v9, %v5799_v56 }
 0xd31   : > { %5486 = vmatmul.mubr.msk.f32.vlgmr.msra.gmra.mrb[40].mxu1 %vm1632_vm2, %v3976_v57 }
 0xd32   : > { %5494 = vmatpush3.msra.mxu1 %v3624_v6  ;;  %5495 = vmatprep.mubr.msk.f32.mxu1 %vm5877_vm1, %v6935_v12 }
 0xd33   : > { %5503 = vmatprep.subr.mxu1 %v6935_v12 }
 0xd36   : > { %v5809_v55 = vpop.eup %5808 }
 0xd37   : > { %v3978_v13 = vmul.f32 %v5809_v55, %v5801_v39 }
 0xd39   : > { %5496 = vmatmul.mubr.msk.f32.vlgmr.msra.gmra.mrb[42].mxu1 %vm1632_vm2, %v3978_v13 }
 0xd3a   : > { %5504 = vmatpush3.msra.mxu1 %v6489_v49  ;;  %5505 = vmatprep.mubr.msk.f32.mxu1 %vm5877_vm1, %v6935_v12 }
 0xd3b   : > { %5513 = vmatprep.subr.mxu1 %v6935_v12 }
 0xdf4   : > { %v4048_v28 = vpop.f32.mrb[44].mxu0 }
 0xdf5   : > { %v5482_v11 = vpop.f32.mrb[45].mxu0  ;;  %5501 = vmatmul.mubr.msk.f32.vlgmr.msra.gmra.mrb[48].mxu0 %vm1632_vm2, %v4048_v28 }
 0xdf6   : > { %5509 = vmatpush3.msra.mxu0 %v6496_v60  ;;  %5510 = vmatprep.mubr.msk.f32.mxu0 %vm5877_vm1, %v6935_v12 }
 0xdf7   : > { %5710 = vmatprep.subr.bf16.mxu0 %v6934_v30 }
 0xdfc   : > { %v4194_v19 = vpop.f32.mrb[46].mxu0 }
 0xdfd   : > { %v5492_v20 = vpop.f32.mrb[47].mxu0  ;;  %5511 = vmatmul.mubr.msk.f32.vlgmr.msra.gmra.mrb[50].mxu0 %vm1632_vm2, %v4194_v19 }
 0xdfe   : > { %5712 = vmatpush3.bf16.msra.mxu0 %v6542_v44  ;;  %5526 = vmatprep.mubr.msk.f32.mxu0 %vm5877_vm1, %v6935_v12 }
 0xdff   : > { %5713 = vmatprep.subr.bf16.mxu0 %v6934_v30 }
 0xe02   : > { %5715 = vmatpush3.bf16.msra.mxu0 %v6552_v29 }
 0xe04   : > { %v4121_v49 = vpop.f32.mrb[40].mxu1 }
 0xe05   : > { %v5487_v60 = vpop.f32.mrb[41].mxu1  ;;  %5506 = vmatmul.mubr.msk.f32.vlgmr.msra.gmra.mrb[44].mxu1 %vm1632_vm2, %v4121_v49 }
 0xe06   : > { %5514 = vmatpush3.msra.mxu1 %v6505_v43  ;;  %5515 = vmatprep.mubr.msk.f32.mxu1 %vm5877_vm1, %v6935_v12 }
 0xe07   : > { %5716 = vmatprep.subr.bf16.mxu1 %v6934_v30 }
 0xe0c   : > { %v4267_v42 = vpop.f32.mrb[42].mxu1 }
 0xe0d   : > { %v5497_v44 = vpop.f32.mrb[43].mxu1  ;;  %5516 = vmatmul.mubr.msk.f32.vlgmr.msra.gmra.mrb[46].mxu1 %vm1632_vm2, %v4267_v42 }
 0xe0e   : > { %5718 = vmatpush3.bf16.msra.mxu1 %v6565_v3  ;;  %5545 = vmatprep.mubr.msk.f32.mxu1 %vm5877_vm1, %v6935_v12 }
 0xe0f   : > { %5719 = vmatprep.subr.bf16.mxu1 %v6934_v30 }
 0xe12   : > { %5721 = vmatpush3.bf16.msra.mxu1 %v6571_v21 }
 0xe13   : > { %5722 = vmatprep.subr.bf16.mxu1 %v6934_v30 }
 0xe16   : > { %5724 = vmatpush3.bf16.msra.mxu1 %v6581_v32 }
 0xe17   : > { %5725 = vmatprep.subr.bf16.mxu1 %v6934_v30 }
 0xe1a   : > { %5727 = vmatpush3.bf16.msra.mxu1 %v6611_v23 }
 0xec8   : > { %v4340_v43 = vpop.f32.mrb[48].mxu0 }
 0xec9   : > { %v5502_v29 = vpop.f32.mrb[49].mxu0  ;;  %v4563_v34 = vsel %vm684_vm0, %v4340_v43, 0.0 }
 0xed0   : > { %v4486_v25 = vpop.f32.mrb[50].mxu0 }
 0xed1   : > { %v5512_v31 = vpop.f32.mrb[51].mxu0  ;;  %v4566_v21 = vsel %vm684_vm0, %v4486_v25, 0.0 }
 0xed8   : > { %v4413_v3 = vpop.f32.mrb[44].mxu1 }
 0xed9   : > { %v4564_v12 = vsel %vm684_vm0, %v4413_v3, 0.0  ;;  %v5507_v41 = vpop.f32.mrb[45].mxu1 }
 0xeda   : > { %v4565_v46 = vadd.f32 %v4564_v12, %v4563_v34 }
 0xedc   : > { %v4567_v47 = vadd.f32 %v4566_v21, %v4565_v46 }
 0xee0   : > { %v4559_v52 = vpop.f32.mrb[46].mxu1 }
 0xee1   : > { %v4568_v32 = vsel %vm684_vm0, %v4559_v52, 0.0  ;;  %v5517_v30 = vpop.f32.mrb[47].mxu1 }
 0xee2   : > { %v4569_v53 = vadd.f32 %v4568_v32, %v4567_v47 }
 0xee4   : > { %v4570_v23 = vadd.f32 %v6525_v51, %v4569_v53 }
 0xee6   : > { %v4571_v58 = vadd.f32 %v4570_v23, %v6635_v33 }
 0xee8   : > { %v4572_v59 = vsel %vm684_vm0, %v4571_v58, 0.0 }
 0xee9   : > { %4573 = vadd.xlane.f32.xlu0 %v4572_v59 }
 0xf76   : > { %v4574_v1 = vpop.xlane.xlu0 %4573 }
 0xf77   : > { %v4575_v2 = vmul.f32 0.03125, %v4574_v1 }
 0xf79   : > { %v4576_v7 = vsub.f32 %v4571_v58, %v4575_v2 }
 0xf7b   : > { %v4577_v8 = vmul.f32 %v4576_v7, %v4576_v7 }
 0xf7d   : > { %v4578_v16 = vsel %vm684_vm0, %v4577_v8, 0.0 }
 0xf7e   : > { %4579 = vadd.xlane.f32.xlu1 %v4578_v16 }
0x100b   : > { %v4580_v18 = vpop.xlane.xlu1 %4579 }
0x100c   : > { %v4581_v26 = vmul.f32 0.03125, %v4580_v18 }
0x100e   : > { %v4582_v27 = vadd.f32 1e-05, %v4581_v26 }
0x1010   : > { %5810 = vrsqrt.f32 %v4582_v27 }
0x101a   : > { %v5811_v35 = vpop.eup %5810 }
0x101b   : > { %v4584_v51 = vmul.f32 %v5811_v35, %v4576_v7 }
0x101d   : > { %v4585_v33 = vmul.f32 %v6589_v48, %v4584_v51 }
0x101f   : > { %v4586_v24 = vadd.f32 %v6594_v63, %v4585_v33 }
0x1021   : > { %5527 = vmatmul.mubr.msk.f32.vlgmr.msra.gmra.mrb[52].mxu0 %vm684_vm0, %v4586_v24 }
0x10f4   : > { %v4656_v37 = vpop.f32.mrb[52].mxu0 }
0x10f5   : > { %v4657_v50 = vadd.f32 %v6618_v10, %v4656_v37  ;;  %v5528_v36 = vpop.f32.mrb[53].mxu0 }
0x10f7   : > { %v4660_v4 = vmax.f32 %v4657_v50, 0.0 }
0x10f9   : > { %5546 = vmatmul.mubr.msk.f32.vlgmr.msra.gmra.mrb[48].mxu1 %vm2687_vm7, %v4660_v4 }
0x11cc   : > { %v4730_v56 = vpop.f32.mrb[48].mxu1 }
0x11cd   : > { %v4734_v62 = vadd.f32 %v4730_v56, %v4571_v58  ;;  %v5547_v48 = vpop.f32.mrb[49].mxu1 }
0x11cf   : > { %v4735_v63 = vadd.f32 %v6631_v45, %v4734_v62 }
0x11d1   : > { %4736 = vst.msk [vmem:[%s577_s21] sm:$0xff] %vm684_vm0, %v4735_v63 }
0x11d2   : > { %5825 = shalt.err (!%p5822_p3)
}
0x11d3   : > { %s5826_s19 = scalar_lea.hbm %s6848_s1, 128  ;;  %s5830_s21 = scalar_lea.hbm %s6909_s18, 256 }
0x11d4   : > { %p5827_p4 = scmp.ne.s32.totalorder %s6848_s1, %s5826_s19  ;;  %p5831_p9 = scmp.lt.u32.totalorder %s6848_s1, %s6909_s18 }
0x11d5   : > { %p5832_p10 = scmp.lt.u32.totalorder %s5830_s21, %s5826_s19  ;;  %p5834_p12 = scmp.lt.u32.totalorder %s5826_s19, %s6848_s1 }
0x11d6   : > { %p5828_p7 = pnand %p5827_p4, %p6015_p5 }
0x11d7   : > { %p5833_p11 = por %p5832_p10, %p5831_p9 }
0x11d8   : > { %p5829_p8 = pneg %p5828_p7 }
0x11d9   : > { %p5835_p13 = por %p5834_p12, %p5833_p11 }
0x11db   : > { %p5836_p0 = pnand %p5835_p13, %p5829_p8 }
0x11dd   : > { %5839 = shalt.err (!%p5836_p0)
}
0x11de   : > { %5728 = dma.vmem_to_hbm [thread:$0]  (%p6015_p5), %s6850_s29, 128, %s6848_s1, %s4738_s27  }
0x11df PF: > { %s6936_s0 = sld [smem:[#allocation7_spill]]  ;;  %s6937_s30 = sld [smem:[#allocation5_spill]] }
0x11e5   : > { %p5734_p1 = scmp.ge.s32.totalorder %s6936_s0, 2  ;;  %s4763_s25 = sand.u32 1, %s6937_s30  }
0x11e6   : > { %s4764_s20 = scalar_lea.sflag [#allocation3], %s4763_s25 }
0x11e7   : > { %p5731_p2 = pnand %p5734_p1, %p6019_p6 }
0x11e9   : > { %5857 = dma.done.wait (!%p5731_p2), %s4764_s20, 128  }
0x11ea   : > { %5859 = vsyncadd (!%p5731_p2), %s4764_s20, 4294967168  ;;  %s6939_s30 = sld [smem:[#allocation8_spill]]  ;;  %s6940_s19 = sld [smem:[#allocation6_spill]] }
0x11eb   : > { %s6941_s29 = sld [smem:[#allocation9_spill]]  ;;  %s6942_s27 = smov %s5866_s28 }
0x11f0   : > { %p28_p3 = scmp.ge.s32.totalorder %s6939_s30, 4   ;;  %s6943_s28 = smov %s6940_s19 }
0x11f2   :  { %30 = sbr.rel (!%p28_p3) target bundleno = 7 (0x7), region = 130 }
0x11f9   :  { %4769 = vsyncpa [#allocation3], 1 }
0x11fa   :  { %4771 = vsyncpa [#allocation3 + $0x1], 1 }

</bundles_post_ra>
